<compile_context>
chip_gen: v6e
topology: v6e:2x2x1
jax: 0.10.0
libtpu: 0.0.40
codegen_flags: <defaults>
</compile_context>

<pallas_src>
import functools

import jax
import jax.numpy as jnp
from jax import lax
from jax.experimental import pallas as pl
from jax.experimental.pallas import tpu as pltpu

MAX_ITER = 20        # fixed-point solver iterations
LANE = 128           # lane width
CHUNK_ROWS = 16      # (rows,128) rows per fixed-point pass -> 8 dense vregs / array
BLOCK_CHUNKS = 8     # chunks per grid block (amortize grid-step overhead)


def _deq_neumann_kernel(x_ref, wt_ref, b_ref, o_ref, *, max_iter, channels, chunk_rows):
    # x_ref : (C, TR, 128) VMEM  — per-channel dense spatial planes (input injection)
    # wt_ref: (C, C)       SMEM  — W^T scalars, so out[c] = sum_k wt[c,k] * z[k]
    # b_ref : (C,)         SMEM  — bias scalars
    # o_ref : (C, TR, 128) VMEM  — output planes
    C = channels

    # Hoisted loop-invariants: C*C weight scalars + C bias scalars live in sregs.
    # vector*scalar multiplies broadcast in hardware — no per-iteration vreg splats.
    wt = [[wt_ref[c, k] for k in range(C)] for c in range(C)]
    bias = [b_ref[c] for c in range(C)]

    n_chunks = x_ref.shape[1] // chunk_rows

    def process(r0):
        # hoist x + b (loop-invariant) out of the fixed-point loop
        xb = tuple(
            x_ref[c, pl.ds(r0, chunk_rows), :].astype(jnp.float32) + bias[c]
            for c in range(C)
        )

        def f(z):
            # f(z, x)[c] = tanh(sum_k W[k,c]*z[k] + b[c] + x[c])
            # C*C scalar-broadcast VPU FMAs + C EUP tanh pushes per step; no MXU.
            out = []
            for c in range(C):
                acc = xb[c]
                for k in range(C):
                    acc = acc + wt[c][k] * z[k]
                out.append(jnp.tanh(acc))
            return tuple(out)

        # solver: max_iter Picard steps from z0 = 0, plus the module's extra f(z, x),
        # folded into a single fully-unrolled loop of max_iter + 1 applications.
        z0 = tuple(jnp.zeros_like(p) for p in xb)
        z = lax.fori_loop(0, max_iter + 1, lambda i, zz: f(zz), z0, unroll=True)

        for c in range(C):
            o_ref[c, pl.ds(r0, chunk_rows), :] = z[c].astype(o_ref.dtype)

    if n_chunks == 1:
        process(0)
    else:
        # outer chunk walk is NOT unrolled: bounds the vreg live-set per chunk.
        def outer(j, carry):
            process(pl.multiple_of(j * chunk_rows, chunk_rows))
            return carry

        lax.fori_loop(0, n_chunks, outer, 0, unroll=False)


def deq_fixed_point_neumann_forward(x_nchw, w, b, *, max_iter=MAX_ITER):
    N, C, H, W_sp = x_nchw.shape
    HW = H * W_sp

    # View NCHW as per-channel dense (rows, 128) planes: (N, C, rows, 128).
    rows = pl.cdiv(HW, LANE)
    chunk = min(CHUNK_ROWS, rows)                       # rows per fixed-point pass
    rows_c = pl.cdiv(rows, chunk) * chunk
    tr_block = min(chunk * BLOCK_CHUNKS, rows_c)        # rows per grid block
    rows_pad = pl.cdiv(rows_c, tr_block) * tr_block
    HW_pad = rows_pad * LANE

    x3d = x_nchw.reshape(N, C, HW)
    if HW_pad != HW:
        # Padded columns iterate tanh(bias) junk — bounded, NaN/Inf-free — and are
        # sliced off after the kernel.
        x3d = jnp.pad(x3d, ((0, 0), (0, 0), (0, HW_pad - HW)))
    x4d = x3d.reshape(N, C, rows_pad, LANE)

    wt = jnp.transpose(w).astype(jnp.float32)   # (C, C) W^T — tiny, host-side
    b32 = b.astype(jnp.float32)                 # (C,)

    # Advisory cost estimate: 21 compute passes per byte moved (compute-bound).
    M = N * HW_pad
    cost = pl.CostEstimate(
        flops=2 * (max_iter + 1) * M * C * C,
        transcendentals=(max_iter + 1) * M * C,
        bytes_accessed=2 * M * C * 4 + C * C * 4 + C * 4,
    )

    kernel = functools.partial(
        _deq_neumann_kernel, max_iter=max_iter, channels=C, chunk_rows=chunk
    )

    out4d = pl.pallas_call(
        kernel,
        out_shape=jax.ShapeDtypeStruct((N, C, rows_pad, LANE), x_nchw.dtype),
        grid_spec=pltpu.PrefetchScalarGridSpec(
            num_scalar_prefetch=0,
            grid=(N, rows_pad // tr_block),
            in_specs=[
                # kernel sees (C, tr_block, 128): leading batch dim squeezed out
                pl.BlockSpec((pl.Squeezed(), C, tr_block, LANE),
                             lambda n, i: (n, 0, i, 0)),
                # tiny parameter tensors go straight to SMEM (scalar reads in-kernel)
                pl.BlockSpec(memory_space=pltpu.MemorySpace.SMEM),   # W^T
                pl.BlockSpec(memory_space=pltpu.MemorySpace.SMEM),   # bias
            ],
            out_specs=pl.BlockSpec((pl.Squeezed(), C, tr_block, LANE),
                                   lambda n, i: (n, 0, i, 0)),
        ),
        compiler_params=pltpu.CompilerParams(
            # both grid axes independent -> shard across TensorCores (v7x has 2)
            dimension_semantics=("parallel", "parallel"),
        ),
        cost_estimate=cost,
    )(x4d, wt, b32)

    out = out4d.reshape(N, C, HW_pad)[:, :, :HW]
    return out.reshape(N, C, H, W_sp)


def _reference_forward(x_nchw, w, b, *, max_iter=MAX_ITER):
    """Pure-JAX reference mirroring the PyTorch forward (channels-last math)."""
    N, C, H, W_sp = x_nchw.shape
    x2d = jnp.transpose(x_nchw, (0, 2, 3, 1)).reshape(N * H * W_sp, C).astype(jnp.float32)
    f = lambda z: jnp.tanh(z @ w.astype(jnp.float32) + b.astype(jnp.float32) + x2d)
    z = jnp.zeros_like(x2d)
    for _ in range(max_iter):
        z = f(z)
    z = f(z)
    return z.reshape(N, H, W_sp, C).transpose(0, 3, 1, 2).astype(x_nchw.dtype)


if __name__ == "__main__":
    key = jax.random.PRNGKey(0)
    kx, kw, kb = jax.random.split(key, 3)

    N, C, H, W = 2, 4, 16, 16
    x = jax.random.normal(kx, (N, C, H, W), dtype=jnp.float32)
    # deterministic "parameters" for the implicit layer f (1x1 conv weight + bias),
    # scaled so the fixed-point map is a contraction.
    w = 0.1 * jax.random.normal(kw, (C, C), dtype=jnp.float32) / jnp.sqrt(C)
    b = 0.01 * jax.random.normal(kb, (C,), dtype=jnp.float32)

    z = deq_fixed_point_neumann_forward(x, w, b)
    z = jax.block_until_ready(z)

    z_ref = _reference_forward(x, w, b)
    assert z.shape == (N, C, H, W)
    assert jnp.allclose(z, z_ref, atol=1e-5, rtol=1e-5), "mismatch vs reference"

    print("KERNEL_OK")
</pallas_src>

<mosaic_0001>
module attributes {stable_mosaic.version = 11 : i64} {
  func.func @_deq_neumann_kernel(%arg0: i32, %arg1: i32, %arg2: memref<1x4x2x128xf32, #tpu.memory_space<vmem>>, %arg3: memref<4x4xf32, #tpu.memory_space<smem>>, %arg4: memref<4xf32, #tpu.memory_space<smem>>, %arg5: memref<1x4x2x128xf32, #tpu.memory_space<vmem>>) attributes {dimension_semantics = [#tpu.dimension_semantics<parallel>, #tpu.dimension_semantics<parallel>], iteration_bounds = array<i64: 2, 1>, scalar_prefetch = 0 : i64, scratch_operands = 0 : i64, tpu.core_type = #tpu.core_type<tc>, window_params = [{transform_indices = @transform_0, window_bounds = array<i64: 1, 4, 2, 128>}, {transform_indices = @transform_1, window_bounds = array<i64: 4, 4>}, {transform_indices = @transform_2, window_bounds = array<i64: 4>}, {transform_indices = @transform_3, window_bounds = array<i64: 1, 4, 2, 128>}]} {
    %c0 = arith.constant 0 : index
    %c0_0 = arith.constant 0 : index
    %0 = memref.load %arg3[%c0, %c0_0] : memref<4x4xf32, #tpu.memory_space<smem>>
    %c0_1 = arith.constant 0 : index
    %c1 = arith.constant 1 : index
    %1 = memref.load %arg3[%c0_1, %c1] : memref<4x4xf32, #tpu.memory_space<smem>>
    %c0_2 = arith.constant 0 : index
    %c2 = arith.constant 2 : index
    %2 = memref.load %arg3[%c0_2, %c2] : memref<4x4xf32, #tpu.memory_space<smem>>
    %c0_3 = arith.constant 0 : index
    %c3 = arith.constant 3 : index
    %3 = memref.load %arg3[%c0_3, %c3] : memref<4x4xf32, #tpu.memory_space<smem>>
    %c1_4 = arith.constant 1 : index
    %c0_5 = arith.constant 0 : index
    %4 = memref.load %arg3[%c1_4, %c0_5] : memref<4x4xf32, #tpu.memory_space<smem>>
    %c1_6 = arith.constant 1 : index
    %c1_7 = arith.constant 1 : index
    %5 = memref.load %arg3[%c1_6, %c1_7] : memref<4x4xf32, #tpu.memory_space<smem>>
    %c1_8 = arith.constant 1 : index
    %c2_9 = arith.constant 2 : index
    %6 = memref.load %arg3[%c1_8, %c2_9] : memref<4x4xf32, #tpu.memory_space<smem>>
    %c1_10 = arith.constant 1 : index
    %c3_11 = arith.constant 3 : index
    %7 = memref.load %arg3[%c1_10, %c3_11] : memref<4x4xf32, #tpu.memory_space<smem>>
    %c2_12 = arith.constant 2 : index
    %c0_13 = arith.constant 0 : index
    %8 = memref.load %arg3[%c2_12, %c0_13] : memref<4x4xf32, #tpu.memory_space<smem>>
    %c2_14 = arith.constant 2 : index
    %c1_15 = arith.constant 1 : index
    %9 = memref.load %arg3[%c2_14, %c1_15] : memref<4x4xf32, #tpu.memory_space<smem>>
    %c2_16 = arith.constant 2 : index
    %c2_17 = arith.constant 2 : index
    %10 = memref.load %arg3[%c2_16, %c2_17] : memref<4x4xf32, #tpu.memory_space<smem>>
    %c2_18 = arith.constant 2 : index
    %c3_19 = arith.constant 3 : index
    %11 = memref.load %arg3[%c2_18, %c3_19] : memref<4x4xf32, #tpu.memory_space<smem>>
    %c3_20 = arith.constant 3 : index
    %c0_21 = arith.constant 0 : index
    %12 = memref.load %arg3[%c3_20, %c0_21] : memref<4x4xf32, #tpu.memory_space<smem>>
    %c3_22 = arith.constant 3 : index
    %c1_23 = arith.constant 1 : index
    %13 = memref.load %arg3[%c3_22, %c1_23] : memref<4x4xf32, #tpu.memory_space<smem>>
    %c3_24 = arith.constant 3 : index
    %c2_25 = arith.constant 2 : index
    %14 = memref.load %arg3[%c3_24, %c2_25] : memref<4x4xf32, #tpu.memory_space<smem>>
    %c3_26 = arith.constant 3 : index
    %c3_27 = arith.constant 3 : index
    %15 = memref.load %arg3[%c3_26, %c3_27] : memref<4x4xf32, #tpu.memory_space<smem>>
    %c0_28 = arith.constant 0 : index
    %16 = memref.load %arg4[%c0_28] : memref<4xf32, #tpu.memory_space<smem>>
    %c1_29 = arith.constant 1 : index
    %17 = memref.load %arg4[%c1_29] : memref<4xf32, #tpu.memory_space<smem>>
    %c2_30 = arith.constant 2 : index
    %18 = memref.load %arg4[%c2_30] : memref<4xf32, #tpu.memory_space<smem>>
    %c3_31 = arith.constant 3 : index
    %19 = memref.load %arg4[%c3_31] : memref<4xf32, #tpu.memory_space<smem>>
    %c0_32 = arith.constant 0 : index
    %c0_33 = arith.constant 0 : index
    %c0_34 = arith.constant 0 : index
    %c0_35 = arith.constant 0 : index
    %20 = vector.load %arg2[%c0_32, %c0_33, %c0_34, %c0_35] : memref<1x4x2x128xf32, #tpu.memory_space<vmem>>, vector<1x1x2x128xf32>
    %21 = vector.shape_cast %20 : vector<1x1x2x128xf32> to vector<2x128xf32>
    %22 = vector.broadcast %16 : f32 to vector<2x128xf32>
    %23 = arith.addf %21, %22 : vector<2x128xf32>
    %c0_36 = arith.constant 0 : index
    %c1_37 = arith.constant 1 : index
    %c0_38 = arith.constant 0 : index
    %c0_39 = arith.constant 0 : index
    %24 = vector.load %arg2[%c0_36, %c1_37, %c0_38, %c0_39] : memref<1x4x2x128xf32, #tpu.memory_space<vmem>>, vector<1x1x2x128xf32>
    %25 = vector.shape_cast %24 : vector<1x1x2x128xf32> to vector<2x128xf32>
    %26 = vector.broadcast %17 : f32 to vector<2x128xf32>
    %27 = arith.addf %25, %26 : vector<2x128xf32>
    %c0_40 = arith.constant 0 : index
    %c2_41 = arith.constant 2 : index
    %c0_42 = arith.constant 0 : index
    %c0_43 = arith.constant 0 : index
    %28 = vector.load %arg2[%c0_40, %c2_41, %c0_42, %c0_43] : memref<1x4x2x128xf32, #tpu.memory_space<vmem>>, vector<1x1x2x128xf32>
    %29 = vector.shape_cast %28 : vector<1x1x2x128xf32> to vector<2x128xf32>
    %30 = vector.broadcast %18 : f32 to vector<2x128xf32>
    %31 = arith.addf %29, %30 : vector<2x128xf32>
    %c0_44 = arith.constant 0 : index
    %c3_45 = arith.constant 3 : index
    %c0_46 = arith.constant 0 : index
    %c0_47 = arith.constant 0 : index
    %32 = vector.load %arg2[%c0_44, %c3_45, %c0_46, %c0_47] : memref<1x4x2x128xf32, #tpu.memory_space<vmem>>, vector<1x1x2x128xf32>
    %33 = vector.shape_cast %32 : vector<1x1x2x128xf32> to vector<2x128xf32>
    %34 = vector.broadcast %19 : f32 to vector<2x128xf32>
    %35 = arith.addf %33, %34 : vector<2x128xf32>
    %cst = arith.constant 0.000000e+00 : f32
    %36 = vector.broadcast %cst : f32 to vector<2x128xf32>
    %cst_48 = arith.constant 0.000000e+00 : f32
    %37 = vector.broadcast %cst_48 : f32 to vector<2x128xf32>
    %cst_49 = arith.constant 0.000000e+00 : f32
    %38 = vector.broadcast %cst_49 : f32 to vector<2x128xf32>
    %cst_50 = arith.constant 0.000000e+00 : f32
    %39 = vector.broadcast %cst_50 : f32 to vector<2x128xf32>
    %c0_i32 = arith.constant 0 : i32
    %40 = vector.broadcast %0 : f32 to vector<2x128xf32>
    %41 = arith.mulf %40, %36 : vector<2x128xf32>
    %42 = arith.addf %23, %41 : vector<2x128xf32>
    %43 = vector.broadcast %1 : f32 to vector<2x128xf32>
    %44 = arith.mulf %43, %37 : vector<2x128xf32>
    %45 = arith.addf %42, %44 : vector<2x128xf32>
    %46 = vector.broadcast %2 : f32 to vector<2x128xf32>
    %47 = arith.mulf %46, %38 : vector<2x128xf32>
    %48 = arith.addf %45, %47 : vector<2x128xf32>
    %49 = vector.broadcast %3 : f32 to vector<2x128xf32>
    %50 = arith.mulf %49, %39 : vector<2x128xf32>
    %51 = arith.addf %48, %50 : vector<2x128xf32>
    %52 = math.tanh %51 : vector<2x128xf32>
    %53 = vector.broadcast %4 : f32 to vector<2x128xf32>
    %54 = arith.mulf %53, %36 : vector<2x128xf32>
    %55 = arith.addf %27, %54 : vector<2x128xf32>
    %56 = vector.broadcast %5 : f32 to vector<2x128xf32>
    %57 = arith.mulf %56, %37 : vector<2x128xf32>
    %58 = arith.addf %55, %57 : vector<2x128xf32>
    %59 = vector.broadcast %6 : f32 to vector<2x128xf32>
    %60 = arith.mulf %59, %38 : vector<2x128xf32>
    %61 = arith.addf %58, %60 : vector<2x128xf32>
    %62 = vector.broadcast %7 : f32 to vector<2x128xf32>
    %63 = arith.mulf %62, %39 : vector<2x128xf32>
    %64 = arith.addf %61, %63 : vector<2x128xf32>
    %65 = math.tanh %64 : vector<2x128xf32>
    %66 = vector.broadcast %8 : f32 to vector<2x128xf32>
    %67 = arith.mulf %66, %36 : vector<2x128xf32>
    %68 = arith.addf %31, %67 : vector<2x128xf32>
    %69 = vector.broadcast %9 : f32 to vector<2x128xf32>
    %70 = arith.mulf %69, %37 : vector<2x128xf32>
    %71 = arith.addf %68, %70 : vector<2x128xf32>
    %72 = vector.broadcast %10 : f32 to vector<2x128xf32>
    %73 = arith.mulf %72, %38 : vector<2x128xf32>
    %74 = arith.addf %71, %73 : vector<2x128xf32>
    %75 = vector.broadcast %11 : f32 to vector<2x128xf32>
    %76 = arith.mulf %75, %39 : vector<2x128xf32>
    %77 = arith.addf %74, %76 : vector<2x128xf32>
    %78 = math.tanh %77 : vector<2x128xf32>
    %79 = vector.broadcast %12 : f32 to vector<2x128xf32>
    %80 = arith.mulf %79, %36 : vector<2x128xf32>
    %81 = arith.addf %35, %80 : vector<2x128xf32>
    %82 = vector.broadcast %13 : f32 to vector<2x128xf32>
    %83 = arith.mulf %82, %37 : vector<2x128xf32>
    %84 = arith.addf %81, %83 : vector<2x128xf32>
    %85 = vector.broadcast %14 : f32 to vector<2x128xf32>
    %86 = arith.mulf %85, %38 : vector<2x128xf32>
    %87 = arith.addf %84, %86 : vector<2x128xf32>
    %88 = vector.broadcast %15 : f32 to vector<2x128xf32>
    %89 = arith.mulf %88, %39 : vector<2x128xf32>
    %90 = arith.addf %87, %89 : vector<2x128xf32>
    %91 = math.tanh %90 : vector<2x128xf32>
    %c1_i32 = arith.constant 1 : i32
    %92 = vector.broadcast %0 : f32 to vector<2x128xf32>
    %93 = arith.mulf %92, %52 : vector<2x128xf32>
    %94 = arith.addf %23, %93 : vector<2x128xf32>
    %95 = vector.broadcast %1 : f32 to vector<2x128xf32>
    %96 = arith.mulf %95, %65 : vector<2x128xf32>
    %97 = arith.addf %94, %96 : vector<2x128xf32>
    %98 = vector.broadcast %2 : f32 to vector<2x128xf32>
    %99 = arith.mulf %98, %78 : vector<2x128xf32>
    %100 = arith.addf %97, %99 : vector<2x128xf32>
    %101 = vector.broadcast %3 : f32 to vector<2x128xf32>
    %102 = arith.mulf %101, %91 : vector<2x128xf32>
    %103 = arith.addf %100, %102 : vector<2x128xf32>
    %104 = math.tanh %103 : vector<2x128xf32>
    %105 = vector.broadcast %4 : f32 to vector<2x128xf32>
    %106 = arith.mulf %105, %52 : vector<2x128xf32>
    %107 = arith.addf %27, %106 : vector<2x128xf32>
    %108 = vector.broadcast %5 : f32 to vector<2x128xf32>
    %109 = arith.mulf %108, %65 : vector<2x128xf32>
    %110 = arith.addf %107, %109 : vector<2x128xf32>
    %111 = vector.broadcast %6 : f32 to vector<2x128xf32>
    %112 = arith.mulf %111, %78 : vector<2x128xf32>
    %113 = arith.addf %110, %112 : vector<2x128xf32>
    %114 = vector.broadcast %7 : f32 to vector<2x128xf32>
    %115 = arith.mulf %114, %91 : vector<2x128xf32>
    %116 = arith.addf %113, %115 : vector<2x128xf32>
    %117 = math.tanh %116 : vector<2x128xf32>
    %118 = vector.broadcast %8 : f32 to vector<2x128xf32>
    %119 = arith.mulf %118, %52 : vector<2x128xf32>
    %120 = arith.addf %31, %119 : vector<2x128xf32>
    %121 = vector.broadcast %9 : f32 to vector<2x128xf32>
    %122 = arith.mulf %121, %65 : vector<2x128xf32>
    %123 = arith.addf %120, %122 : vector<2x128xf32>
    %124 = vector.broadcast %10 : f32 to vector<2x128xf32>
    %125 = arith.mulf %124, %78 : vector<2x128xf32>
    %126 = arith.addf %123, %125 : vector<2x128xf32>
    %127 = vector.broadcast %11 : f32 to vector<2x128xf32>
    %128 = arith.mulf %127, %91 : vector<2x128xf32>
    %129 = arith.addf %126, %128 : vector<2x128xf32>
    %130 = math.tanh %129 : vector<2x128xf32>
    %131 = vector.broadcast %12 : f32 to vector<2x128xf32>
    %132 = arith.mulf %131, %52 : vector<2x128xf32>
    %133 = arith.addf %35, %132 : vector<2x128xf32>
    %134 = vector.broadcast %13 : f32 to vector<2x128xf32>
    %135 = arith.mulf %134, %65 : vector<2x128xf32>
    %136 = arith.addf %133, %135 : vector<2x128xf32>
    %137 = vector.broadcast %14 : f32 to vector<2x128xf32>
    %138 = arith.mulf %137, %78 : vector<2x128xf32>
    %139 = arith.addf %136, %138 : vector<2x128xf32>
    %140 = vector.broadcast %15 : f32 to vector<2x128xf32>
    %141 = arith.mulf %140, %91 : vector<2x128xf32>
    %142 = arith.addf %139, %141 : vector<2x128xf32>
    %143 = math.tanh %142 : vector<2x128xf32>
    %c2_i32 = arith.constant 2 : i32
    %144 = vector.broadcast %0 : f32 to vector<2x128xf32>
    %145 = arith.mulf %144, %104 : vector<2x128xf32>
    %146 = arith.addf %23, %145 : vector<2x128xf32>
    %147 = vector.broadcast %1 : f32 to vector<2x128xf32>
    %148 = arith.mulf %147, %117 : vector<2x128xf32>
    %149 = arith.addf %146, %148 : vector<2x128xf32>
    %150 = vector.broadcast %2 : f32 to vector<2x128xf32>
    %151 = arith.mulf %150, %130 : vector<2x128xf32>
    %152 = arith.addf %149, %151 : vector<2x128xf32>
    %153 = vector.broadcast %3 : f32 to vector<2x128xf32>
    %154 = arith.mulf %153, %143 : vector<2x128xf32>
    %155 = arith.addf %152, %154 : vector<2x128xf32>
    %156 = math.tanh %155 : vector<2x128xf32>
    %157 = vector.broadcast %4 : f32 to vector<2x128xf32>
    %158 = arith.mulf %157, %104 : vector<2x128xf32>
    %159 = arith.addf %27, %158 : vector<2x128xf32>
    %160 = vector.broadcast %5 : f32 to vector<2x128xf32>
    %161 = arith.mulf %160, %117 : vector<2x128xf32>
    %162 = arith.addf %159, %161 : vector<2x128xf32>
    %163 = vector.broadcast %6 : f32 to vector<2x128xf32>
    %164 = arith.mulf %163, %130 : vector<2x128xf32>
    %165 = arith.addf %162, %164 : vector<2x128xf32>
    %166 = vector.broadcast %7 : f32 to vector<2x128xf32>
    %167 = arith.mulf %166, %143 : vector<2x128xf32>
    %168 = arith.addf %165, %167 : vector<2x128xf32>
    %169 = math.tanh %168 : vector<2x128xf32>
    %170 = vector.broadcast %8 : f32 to vector<2x128xf32>
    %171 = arith.mulf %170, %104 : vector<2x128xf32>
    %172 = arith.addf %31, %171 : vector<2x128xf32>
    %173 = vector.broadcast %9 : f32 to vector<2x128xf32>
    %174 = arith.mulf %173, %117 : vector<2x128xf32>
    %175 = arith.addf %172, %174 : vector<2x128xf32>
    %176 = vector.broadcast %10 : f32 to vector<2x128xf32>
    %177 = arith.mulf %176, %130 : vector<2x128xf32>
    %178 = arith.addf %175, %177 : vector<2x128xf32>
    %179 = vector.broadcast %11 : f32 to vector<2x128xf32>
    %180 = arith.mulf %179, %143 : vector<2x128xf32>
    %181 = arith.addf %178, %180 : vector<2x128xf32>
    %182 = math.tanh %181 : vector<2x128xf32>
    %183 = vector.broadcast %12 : f32 to vector<2x128xf32>
    %184 = arith.mulf %183, %104 : vector<2x128xf32>
    %185 = arith.addf %35, %184 : vector<2x128xf32>
    %186 = vector.broadcast %13 : f32 to vector<2x128xf32>
    %187 = arith.mulf %186, %117 : vector<2x128xf32>
    %188 = arith.addf %185, %187 : vector<2x128xf32>
    %189 = vector.broadcast %14 : f32 to vector<2x128xf32>
    %190 = arith.mulf %189, %130 : vector<2x128xf32>
    %191 = arith.addf %188, %190 : vector<2x128xf32>
    %192 = vector.broadcast %15 : f32 to vector<2x128xf32>
    %193 = arith.mulf %192, %143 : vector<2x128xf32>
    %194 = arith.addf %191, %193 : vector<2x128xf32>
    %195 = math.tanh %194 : vector<2x128xf32>
    %c3_i32 = arith.constant 3 : i32
    %196 = vector.broadcast %0 : f32 to vector<2x128xf32>
    %197 = arith.mulf %196, %156 : vector<2x128xf32>
    %198 = arith.addf %23, %197 : vector<2x128xf32>
    %199 = vector.broadcast %1 : f32 to vector<2x128xf32>
    %200 = arith.mulf %199, %169 : vector<2x128xf32>
    %201 = arith.addf %198, %200 : vector<2x128xf32>
    %202 = vector.broadcast %2 : f32 to vector<2x128xf32>
    %203 = arith.mulf %202, %182 : vector<2x128xf32>
    %204 = arith.addf %201, %203 : vector<2x128xf32>
    %205 = vector.broadcast %3 : f32 to vector<2x128xf32>
    %206 = arith.mulf %205, %195 : vector<2x128xf32>
    %207 = arith.addf %204, %206 : vector<2x128xf32>
    %208 = math.tanh %207 : vector<2x128xf32>
    %209 = vector.broadcast %4 : f32 to vector<2x128xf32>
    %210 = arith.mulf %209, %156 : vector<2x128xf32>
    %211 = arith.addf %27, %210 : vector<2x128xf32>
    %212 = vector.broadcast %5 : f32 to vector<2x128xf32>
    %213 = arith.mulf %212, %169 : vector<2x128xf32>
    %214 = arith.addf %211, %213 : vector<2x128xf32>
    %215 = vector.broadcast %6 : f32 to vector<2x128xf32>
    %216 = arith.mulf %215, %182 : vector<2x128xf32>
    %217 = arith.addf %214, %216 : vector<2x128xf32>
    %218 = vector.broadcast %7 : f32 to vector<2x128xf32>
    %219 = arith.mulf %218, %195 : vector<2x128xf32>
    %220 = arith.addf %217, %219 : vector<2x128xf32>
    %221 = math.tanh %220 : vector<2x128xf32>
    %222 = vector.broadcast %8 : f32 to vector<2x128xf32>
    %223 = arith.mulf %222, %156 : vector<2x128xf32>
    %224 = arith.addf %31, %223 : vector<2x128xf32>
    %225 = vector.broadcast %9 : f32 to vector<2x128xf32>
    %226 = arith.mulf %225, %169 : vector<2x128xf32>
    %227 = arith.addf %224, %226 : vector<2x128xf32>
    %228 = vector.broadcast %10 : f32 to vector<2x128xf32>
    %229 = arith.mulf %228, %182 : vector<2x128xf32>
    %230 = arith.addf %227, %229 : vector<2x128xf32>
    %231 = vector.broadcast %11 : f32 to vector<2x128xf32>
    %232 = arith.mulf %231, %195 : vector<2x128xf32>
    %233 = arith.addf %230, %232 : vector<2x128xf32>
    %234 = math.tanh %233 : vector<2x128xf32>
    %235 = vector.broadcast %12 : f32 to vector<2x128xf32>
    %236 = arith.mulf %235, %156 : vector<2x128xf32>
    %237 = arith.addf %35, %236 : vector<2x128xf32>
    %238 = vector.broadcast %13 : f32 to vector<2x128xf32>
    %239 = arith.mulf %238, %169 : vector<2x128xf32>
    %240 = arith.addf %237, %239 : vector<2x128xf32>
    %241 = vector.broadcast %14 : f32 to vector<2x128xf32>
    %242 = arith.mulf %241, %182 : vector<2x128xf32>
    %243 = arith.addf %240, %242 : vector<2x128xf32>
    %244 = vector.broadcast %15 : f32 to vector<2x128xf32>
    %245 = arith.mulf %244, %195 : vector<2x128xf32>
    %246 = arith.addf %243, %245 : vector<2x128xf32>
    %247 = math.tanh %246 : vector<2x128xf32>
    %c4_i32 = arith.constant 4 : i32
    %248 = vector.broadcast %0 : f32 to vector<2x128xf32>
    %249 = arith.mulf %248, %208 : vector<2x128xf32>
    %250 = arith.addf %23, %249 : vector<2x128xf32>
    %251 = vector.broadcast %1 : f32 to vector<2x128xf32>
    %252 = arith.mulf %251, %221 : vector<2x128xf32>
    %253 = arith.addf %250, %252 : vector<2x128xf32>
    %254 = vector.broadcast %2 : f32 to vector<2x128xf32>
    %255 = arith.mulf %254, %234 : vector<2x128xf32>
    %256 = arith.addf %253, %255 : vector<2x128xf32>
    %257 = vector.broadcast %3 : f32 to vector<2x128xf32>
    %258 = arith.mulf %257, %247 : vector<2x128xf32>
    %259 = arith.addf %256, %258 : vector<2x128xf32>
    %260 = math.tanh %259 : vector<2x128xf32>
    %261 = vector.broadcast %4 : f32 to vector<2x128xf32>
    %262 = arith.mulf %261, %208 : vector<2x128xf32>
    %263 = arith.addf %27, %262 : vector<2x128xf32>
    %264 = vector.broadcast %5 : f32 to vector<2x128xf32>
    %265 = arith.mulf %264, %221 : vector<2x128xf32>
    %266 = arith.addf %263, %265 : vector<2x128xf32>
    %267 = vector.broadcast %6 : f32 to vector<2x128xf32>
    %268 = arith.mulf %267, %234 : vector<2x128xf32>
    %269 = arith.addf %266, %268 : vector<2x128xf32>
    %270 = vector.broadcast %7 : f32 to vector<2x128xf32>
    %271 = arith.mulf %270, %247 : vector<2x128xf32>
    %272 = arith.addf %269, %271 : vector<2x128xf32>
    %273 = math.tanh %272 : vector<2x128xf32>
    %274 = vector.broadcast %8 : f32 to vector<2x128xf32>
    %275 = arith.mulf %274, %208 : vector<2x128xf32>
    %276 = arith.addf %31, %275 : vector<2x128xf32>
    %277 = vector.broadcast %9 : f32 to vector<2x128xf32>
    %278 = arith.mulf %277, %221 : vector<2x128xf32>
    %279 = arith.addf %276, %278 : vector<2x128xf32>
    %280 = vector.broadcast %10 : f32 to vector<2x128xf32>
    %281 = arith.mulf %280, %234 : vector<2x128xf32>
    %282 = arith.addf %279, %281 : vector<2x128xf32>
    %283 = vector.broadcast %11 : f32 to vector<2x128xf32>
    %284 = arith.mulf %283, %247 : vector<2x128xf32>
    %285 = arith.addf %282, %284 : vector<2x128xf32>
    %286 = math.tanh %285 : vector<2x128xf32>
    %287 = vector.broadcast %12 : f32 to vector<2x128xf32>
    %288 = arith.mulf %287, %208 : vector<2x128xf32>
    %289 = arith.addf %35, %288 : vector<2x128xf32>
    %290 = vector.broadcast %13 : f32 to vector<2x128xf32>
    %291 = arith.mulf %290, %221 : vector<2x128xf32>
    %292 = arith.addf %289, %291 : vector<2x128xf32>
    %293 = vector.broadcast %14 : f32 to vector<2x128xf32>
    %294 = arith.mulf %293, %234 : vector<2x128xf32>
    %295 = arith.addf %292, %294 : vector<2x128xf32>
    %296 = vector.broadcast %15 : f32 to vector<2x128xf32>
    %297 = arith.mulf %296, %247 : vector<2x128xf32>
    %298 = arith.addf %295, %297 : vector<2x128xf32>
    %299 = math.tanh %298 : vector<2x128xf32>
    %c5_i32 = arith.constant 5 : i32
    %300 = vector.broadcast %0 : f32 to vector<2x128xf32>
    %301 = arith.mulf %300, %260 : vector<2x128xf32>
    %302 = arith.addf %23, %301 : vector<2x128xf32>
    %303 = vector.broadcast %1 : f32 to vector<2x128xf32>
    %304 = arith.mulf %303, %273 : vector<2x128xf32>
    %305 = arith.addf %302, %304 : vector<2x128xf32>
    %306 = vector.broadcast %2 : f32 to vector<2x128xf32>
    %307 = arith.mulf %306, %286 : vector<2x128xf32>
    %308 = arith.addf %305, %307 : vector<2x128xf32>
    %309 = vector.broadcast %3 : f32 to vector<2x128xf32>
    %310 = arith.mulf %309, %299 : vector<2x128xf32>
    %311 = arith.addf %308, %310 : vector<2x128xf32>
    %312 = math.tanh %311 : vector<2x128xf32>
    %313 = vector.broadcast %4 : f32 to vector<2x128xf32>
    %314 = arith.mulf %313, %260 : vector<2x128xf32>
    %315 = arith.addf %27, %314 : vector<2x128xf32>
    %316 = vector.broadcast %5 : f32 to vector<2x128xf32>
    %317 = arith.mulf %316, %273 : vector<2x128xf32>
    %318 = arith.addf %315, %317 : vector<2x128xf32>
    %319 = vector.broadcast %6 : f32 to vector<2x128xf32>
    %320 = arith.mulf %319, %286 : vector<2x128xf32>
    %321 = arith.addf %318, %320 : vector<2x128xf32>
    %322 = vector.broadcast %7 : f32 to vector<2x128xf32>
    %323 = arith.mulf %322, %299 : vector<2x128xf32>
    %324 = arith.addf %321, %323 : vector<2x128xf32>
    %325 = math.tanh %324 : vector<2x128xf32>
    %326 = vector.broadcast %8 : f32 to vector<2x128xf32>
    %327 = arith.mulf %326, %260 : vector<2x128xf32>
    %328 = arith.addf %31, %327 : vector<2x128xf32>
    %329 = vector.broadcast %9 : f32 to vector<2x128xf32>
    %330 = arith.mulf %329, %273 : vector<2x128xf32>
    %331 = arith.addf %328, %330 : vector<2x128xf32>
    %332 = vector.broadcast %10 : f32 to vector<2x128xf32>
    %333 = arith.mulf %332, %286 : vector<2x128xf32>
    %334 = arith.addf %331, %333 : vector<2x128xf32>
    %335 = vector.broadcast %11 : f32 to vector<2x128xf32>
    %336 = arith.mulf %335, %299 : vector<2x128xf32>
    %337 = arith.addf %334, %336 : vector<2x128xf32>
    %338 = math.tanh %337 : vector<2x128xf32>
    %339 = vector.broadcast %12 : f32 to vector<2x128xf32>
    %340 = arith.mulf %339, %260 : vector<2x128xf32>
    %341 = arith.addf %35, %340 : vector<2x128xf32>
    %342 = vector.broadcast %13 : f32 to vector<2x128xf32>
    %343 = arith.mulf %342, %273 : vector<2x128xf32>
    %344 = arith.addf %341, %343 : vector<2x128xf32>
    %345 = vector.broadcast %14 : f32 to vector<2x128xf32>
    %346 = arith.mulf %345, %286 : vector<2x128xf32>
    %347 = arith.addf %344, %346 : vector<2x128xf32>
    %348 = vector.broadcast %15 : f32 to vector<2x128xf32>
    %349 = arith.mulf %348, %299 : vector<2x128xf32>
    %350 = arith.addf %347, %349 : vector<2x128xf32>
    %351 = math.tanh %350 : vector<2x128xf32>
    %c6_i32 = arith.constant 6 : i32
    %352 = vector.broadcast %0 : f32 to vector<2x128xf32>
    %353 = arith.mulf %352, %312 : vector<2x128xf32>
    %354 = arith.addf %23, %353 : vector<2x128xf32>
    %355 = vector.broadcast %1 : f32 to vector<2x128xf32>
    %356 = arith.mulf %355, %325 : vector<2x128xf32>
    %357 = arith.addf %354, %356 : vector<2x128xf32>
    %358 = vector.broadcast %2 : f32 to vector<2x128xf32>
    %359 = arith.mulf %358, %338 : vector<2x128xf32>
    %360 = arith.addf %357, %359 : vector<2x128xf32>
    %361 = vector.broadcast %3 : f32 to vector<2x128xf32>
    %362 = arith.mulf %361, %351 : vector<2x128xf32>
    %363 = arith.addf %360, %362 : vector<2x128xf32>
    %364 = math.tanh %363 : vector<2x128xf32>
    %365 = vector.broadcast %4 : f32 to vector<2x128xf32>
    %366 = arith.mulf %365, %312 : vector<2x128xf32>
    %367 = arith.addf %27, %366 : vector<2x128xf32>
    %368 = vector.broadcast %5 : f32 to vector<2x128xf32>
    %369 = arith.mulf %368, %325 : vector<2x128xf32>
    %370 = arith.addf %367, %369 : vector<2x128xf32>
    %371 = vector.broadcast %6 : f32 to vector<2x128xf32>
    %372 = arith.mulf %371, %338 : vector<2x128xf32>
    %373 = arith.addf %370, %372 : vector<2x128xf32>
    %374 = vector.broadcast %7 : f32 to vector<2x128xf32>
    %375 = arith.mulf %374, %351 : vector<2x128xf32>
    %376 = arith.addf %373, %375 : vector<2x128xf32>
    %377 = math.tanh %376 : vector<2x128xf32>
    %378 = vector.broadcast %8 : f32 to vector<2x128xf32>
    %379 = arith.mulf %378, %312 : vector<2x128xf32>
    %380 = arith.addf %31, %379 : vector<2x128xf32>
    %381 = vector.broadcast %9 : f32 to vector<2x128xf32>
    %382 = arith.mulf %381, %325 : vector<2x128xf32>
    %383 = arith.addf %380, %382 : vector<2x128xf32>
    %384 = vector.broadcast %10 : f32 to vector<2x128xf32>
    %385 = arith.mulf %384, %338 : vector<2x128xf32>
    %386 = arith.addf %383, %385 : vector<2x128xf32>
    %387 = vector.broadcast %11 : f32 to vector<2x128xf32>
    %388 = arith.mulf %387, %351 : vector<2x128xf32>
    %389 = arith.addf %386, %388 : vector<2x128xf32>
    %390 = math.tanh %389 : vector<2x128xf32>
    %391 = vector.broadcast %12 : f32 to vector<2x128xf32>
    %392 = arith.mulf %391, %312 : vector<2x128xf32>
    %393 = arith.addf %35, %392 : vector<2x128xf32>
    %394 = vector.broadcast %13 : f32 to vector<2x128xf32>
    %395 = arith.mulf %394, %325 : vector<2x128xf32>
    %396 = arith.addf %393, %395 : vector<2x128xf32>
    %397 = vector.broadcast %14 : f32 to vector<2x128xf32>
    %398 = arith.mulf %397, %338 : vector<2x128xf32>
    %399 = arith.addf %396, %398 : vector<2x128xf32>
    %400 = vector.broadcast %15 : f32 to vector<2x128xf32>
    %401 = arith.mulf %400, %351 : vector<2x128xf32>
    %402 = arith.addf %399, %401 : vector<2x128xf32>
    %403 = math.tanh %402 : vector<2x128xf32>
    %c7_i32 = arith.constant 7 : i32
    %404 = vector.broadcast %0 : f32 to vector<2x128xf32>
    %405 = arith.mulf %404, %364 : vector<2x128xf32>
    %406 = arith.addf %23, %405 : vector<2x128xf32>
    %407 = vector.broadcast %1 : f32 to vector<2x128xf32>
    %408 = arith.mulf %407, %377 : vector<2x128xf32>
    %409 = arith.addf %406, %408 : vector<2x128xf32>
    %410 = vector.broadcast %2 : f32 to vector<2x128xf32>
    %411 = arith.mulf %410, %390 : vector<2x128xf32>
    %412 = arith.addf %409, %411 : vector<2x128xf32>
    %413 = vector.broadcast %3 : f32 to vector<2x128xf32>
    %414 = arith.mulf %413, %403 : vector<2x128xf32>
    %415 = arith.addf %412, %414 : vector<2x128xf32>
    %416 = math.tanh %415 : vector<2x128xf32>
    %417 = vector.broadcast %4 : f32 to vector<2x128xf32>
    %418 = arith.mulf %417, %364 : vector<2x128xf32>
    %419 = arith.addf %27, %418 : vector<2x128xf32>
    %420 = vector.broadcast %5 : f32 to vector<2x128xf32>
    %421 = arith.mulf %420, %377 : vector<2x128xf32>
    %422 = arith.addf %419, %421 : vector<2x128xf32>
    %423 = vector.broadcast %6 : f32 to vector<2x128xf32>
    %424 = arith.mulf %423, %390 : vector<2x128xf32>
    %425 = arith.addf %422, %424 : vector<2x128xf32>
    %426 = vector.broadcast %7 : f32 to vector<2x128xf32>
    %427 = arith.mulf %426, %403 : vector<2x128xf32>
    %428 = arith.addf %425, %427 : vector<2x128xf32>
    %429 = math.tanh %428 : vector<2x128xf32>
    %430 = vector.broadcast %8 : f32 to vector<2x128xf32>
    %431 = arith.mulf %430, %364 : vector<2x128xf32>
    %432 = arith.addf %31, %431 : vector<2x128xf32>
    %433 = vector.broadcast %9 : f32 to vector<2x128xf32>
    %434 = arith.mulf %433, %377 : vector<2x128xf32>
    %435 = arith.addf %432, %434 : vector<2x128xf32>
    %436 = vector.broadcast %10 : f32 to vector<2x128xf32>
    %437 = arith.mulf %436, %390 : vector<2x128xf32>
    %438 = arith.addf %435, %437 : vector<2x128xf32>
    %439 = vector.broadcast %11 : f32 to vector<2x128xf32>
    %440 = arith.mulf %439, %403 : vector<2x128xf32>
    %441 = arith.addf %438, %440 : vector<2x128xf32>
    %442 = math.tanh %441 : vector<2x128xf32>
    %443 = vector.broadcast %12 : f32 to vector<2x128xf32>
    %444 = arith.mulf %443, %364 : vector<2x128xf32>
    %445 = arith.addf %35, %444 : vector<2x128xf32>
    %446 = vector.broadcast %13 : f32 to vector<2x128xf32>
    %447 = arith.mulf %446, %377 : vector<2x128xf32>
    %448 = arith.addf %445, %447 : vector<2x128xf32>
    %449 = vector.broadcast %14 : f32 to vector<2x128xf32>
    %450 = arith.mulf %449, %390 : vector<2x128xf32>
    %451 = arith.addf %448, %450 : vector<2x128xf32>
    %452 = vector.broadcast %15 : f32 to vector<2x128xf32>
    %453 = arith.mulf %452, %403 : vector<2x128xf32>
    %454 = arith.addf %451, %453 : vector<2x128xf32>
    %455 = math.tanh %454 : vector<2x128xf32>
    %c8_i32 = arith.constant 8 : i32
    %456 = vector.broadcast %0 : f32 to vector<2x128xf32>
    %457 = arith.mulf %456, %416 : vector<2x128xf32>
    %458 = arith.addf %23, %457 : vector<2x128xf32>
    %459 = vector.broadcast %1 : f32 to vector<2x128xf32>
    %460 = arith.mulf %459, %429 : vector<2x128xf32>
    %461 = arith.addf %458, %460 : vector<2x128xf32>
    %462 = vector.broadcast %2 : f32 to vector<2x128xf32>
    %463 = arith.mulf %462, %442 : vector<2x128xf32>
    %464 = arith.addf %461, %463 : vector<2x128xf32>
    %465 = vector.broadcast %3 : f32 to vector<2x128xf32>
    %466 = arith.mulf %465, %455 : vector<2x128xf32>
    %467 = arith.addf %464, %466 : vector<2x128xf32>
    %468 = math.tanh %467 : vector<2x128xf32>
    %469 = vector.broadcast %4 : f32 to vector<2x128xf32>
    %470 = arith.mulf %469, %416 : vector<2x128xf32>
    %471 = arith.addf %27, %470 : vector<2x128xf32>
    %472 = vector.broadcast %5 : f32 to vector<2x128xf32>
    %473 = arith.mulf %472, %429 : vector<2x128xf32>
    %474 = arith.addf %471, %473 : vector<2x128xf32>
    %475 = vector.broadcast %6 : f32 to vector<2x128xf32>
    %476 = arith.mulf %475, %442 : vector<2x128xf32>
    %477 = arith.addf %474, %476 : vector<2x128xf32>
    %478 = vector.broadcast %7 : f32 to vector<2x128xf32>
    %479 = arith.mulf %478, %455 : vector<2x128xf32>
    %480 = arith.addf %477, %479 : vector<2x128xf32>
    %481 = math.tanh %480 : vector<2x128xf32>
    %482 = vector.broadcast %8 : f32 to vector<2x128xf32>
    %483 = arith.mulf %482, %416 : vector<2x128xf32>
    %484 = arith.addf %31, %483 : vector<2x128xf32>
    %485 = vector.broadcast %9 : f32 to vector<2x128xf32>
    %486 = arith.mulf %485, %429 : vector<2x128xf32>
    %487 = arith.addf %484, %486 : vector<2x128xf32>
    %488 = vector.broadcast %10 : f32 to vector<2x128xf32>
    %489 = arith.mulf %488, %442 : vector<2x128xf32>
    %490 = arith.addf %487, %489 : vector<2x128xf32>
    %491 = vector.broadcast %11 : f32 to vector<2x128xf32>
    %492 = arith.mulf %491, %455 : vector<2x128xf32>
    %493 = arith.addf %490, %492 : vector<2x128xf32>
    %494 = math.tanh %493 : vector<2x128xf32>
    %495 = vector.broadcast %12 : f32 to vector<2x128xf32>
    %496 = arith.mulf %495, %416 : vector<2x128xf32>
    %497 = arith.addf %35, %496 : vector<2x128xf32>
    %498 = vector.broadcast %13 : f32 to vector<2x128xf32>
    %499 = arith.mulf %498, %429 : vector<2x128xf32>
    %500 = arith.addf %497, %499 : vector<2x128xf32>
    %501 = vector.broadcast %14 : f32 to vector<2x128xf32>
    %502 = arith.mulf %501, %442 : vector<2x128xf32>
    %503 = arith.addf %500, %502 : vector<2x128xf32>
    %504 = vector.broadcast %15 : f32 to vector<2x128xf32>
    %505 = arith.mulf %504, %455 : vector<2x128xf32>
    %506 = arith.addf %503, %505 : vector<2x128xf32>
    %507 = math.tanh %506 : vector<2x128xf32>
    %c9_i32 = arith.constant 9 : i32
    %508 = vector.broadcast %0 : f32 to vector<2x128xf32>
    %509 = arith.mulf %508, %468 : vector<2x128xf32>
    %510 = arith.addf %23, %509 : vector<2x128xf32>
    %511 = vector.broadcast %1 : f32 to vector<2x128xf32>
    %512 = arith.mulf %511, %481 : vector<2x128xf32>
    %513 = arith.addf %510, %512 : vector<2x128xf32>
    %514 = vector.broadcast %2 : f32 to vector<2x128xf32>
    %515 = arith.mulf %514, %494 : vector<2x128xf32>
    %516 = arith.addf %513, %515 : vector<2x128xf32>
    %517 = vector.broadcast %3 : f32 to vector<2x128xf32>
    %518 = arith.mulf %517, %507 : vector<2x128xf32>
    %519 = arith.addf %516, %518 : vector<2x128xf32>
    %520 = math.tanh %519 : vector<2x128xf32>
    %521 = vector.broadcast %4 : f32 to vector<2x128xf32>
    %522 = arith.mulf %521, %468 : vector<2x128xf32>
    %523 = arith.addf %27, %522 : vector<2x128xf32>
    %524 = vector.broadcast %5 : f32 to vector<2x128xf32>
    %525 = arith.mulf %524, %481 : vector<2x128xf32>
    %526 = arith.addf %523, %525 : vector<2x128xf32>
    %527 = vector.broadcast %6 : f32 to vector<2x128xf32>
    %528 = arith.mulf %527, %494 : vector<2x128xf32>
    %529 = arith.addf %526, %528 : vector<2x128xf32>
    %530 = vector.broadcast %7 : f32 to vector<2x128xf32>
    %531 = arith.mulf %530, %507 : vector<2x128xf32>
    %532 = arith.addf %529, %531 : vector<2x128xf32>
    %533 = math.tanh %532 : vector<2x128xf32>
    %534 = vector.broadcast %8 : f32 to vector<2x128xf32>
    %535 = arith.mulf %534, %468 : vector<2x128xf32>
    %536 = arith.addf %31, %535 : vector<2x128xf32>
    %537 = vector.broadcast %9 : f32 to vector<2x128xf32>
    %538 = arith.mulf %537, %481 : vector<2x128xf32>
    %539 = arith.addf %536, %538 : vector<2x128xf32>
    %540 = vector.broadcast %10 : f32 to vector<2x128xf32>
    %541 = arith.mulf %540, %494 : vector<2x128xf32>
    %542 = arith.addf %539, %541 : vector<2x128xf32>
    %543 = vector.broadcast %11 : f32 to vector<2x128xf32>
    %544 = arith.mulf %543, %507 : vector<2x128xf32>
    %545 = arith.addf %542, %544 : vector<2x128xf32>
    %546 = math.tanh %545 : vector<2x128xf32>
    %547 = vector.broadcast %12 : f32 to vector<2x128xf32>
    %548 = arith.mulf %547, %468 : vector<2x128xf32>
    %549 = arith.addf %35, %548 : vector<2x128xf32>
    %550 = vector.broadcast %13 : f32 to vector<2x128xf32>
    %551 = arith.mulf %550, %481 : vector<2x128xf32>
    %552 = arith.addf %549, %551 : vector<2x128xf32>
    %553 = vector.broadcast %14 : f32 to vector<2x128xf32>
    %554 = arith.mulf %553, %494 : vector<2x128xf32>
    %555 = arith.addf %552, %554 : vector<2x128xf32>
    %556 = vector.broadcast %15 : f32 to vector<2x128xf32>
    %557 = arith.mulf %556, %507 : vector<2x128xf32>
    %558 = arith.addf %555, %557 : vector<2x128xf32>
    %559 = math.tanh %558 : vector<2x128xf32>
    %c10_i32 = arith.constant 10 : i32
    %560 = vector.broadcast %0 : f32 to vector<2x128xf32>
    %561 = arith.mulf %560, %520 : vector<2x128xf32>
    %562 = arith.addf %23, %561 : vector<2x128xf32>
    %563 = vector.broadcast %1 : f32 to vector<2x128xf32>
    %564 = arith.mulf %563, %533 : vector<2x128xf32>
    %565 = arith.addf %562, %564 : vector<2x128xf32>
    %566 = vector.broadcast %2 : f32 to vector<2x128xf32>
    %567 = arith.mulf %566, %546 : vector<2x128xf32>
    %568 = arith.addf %565, %567 : vector<2x128xf32>
    %569 = vector.broadcast %3 : f32 to vector<2x128xf32>
    %570 = arith.mulf %569, %559 : vector<2x128xf32>
    %571 = arith.addf %568, %570 : vector<2x128xf32>
    %572 = math.tanh %571 : vector<2x128xf32>
    %573 = vector.broadcast %4 : f32 to vector<2x128xf32>
    %574 = arith.mulf %573, %520 : vector<2x128xf32>
    %575 = arith.addf %27, %574 : vector<2x128xf32>
    %576 = vector.broadcast %5 : f32 to vector<2x128xf32>
    %577 = arith.mulf %576, %533 : vector<2x128xf32>
    %578 = arith.addf %575, %577 : vector<2x128xf32>
    %579 = vector.broadcast %6 : f32 to vector<2x128xf32>
    %580 = arith.mulf %579, %546 : vector<2x128xf32>
    %581 = arith.addf %578, %580 : vector<2x128xf32>
    %582 = vector.broadcast %7 : f32 to vector<2x128xf32>
    %583 = arith.mulf %582, %559 : vector<2x128xf32>
    %584 = arith.addf %581, %583 : vector<2x128xf32>
    %585 = math.tanh %584 : vector<2x128xf32>
    %586 = vector.broadcast %8 : f32 to vector<2x128xf32>
    %587 = arith.mulf %586, %520 : vector<2x128xf32>
    %588 = arith.addf %31, %587 : vector<2x128xf32>
    %589 = vector.broadcast %9 : f32 to vector<2x128xf32>
    %590 = arith.mulf %589, %533 : vector<2x128xf32>
    %591 = arith.addf %588, %590 : vector<2x128xf32>
    %592 = vector.broadcast %10 : f32 to vector<2x128xf32>
    %593 = arith.mulf %592, %546 : vector<2x128xf32>
    %594 = arith.addf %591, %593 : vector<2x128xf32>
    %595 = vector.broadcast %11 : f32 to vector<2x128xf32>
    %596 = arith.mulf %595, %559 : vector<2x128xf32>
    %597 = arith.addf %594, %596 : vector<2x128xf32>
    %598 = math.tanh %597 : vector<2x128xf32>
    %599 = vector.broadcast %12 : f32 to vector<2x128xf32>
    %600 = arith.mulf %599, %520 : vector<2x128xf32>
    %601 = arith.addf %35, %600 : vector<2x128xf32>
    %602 = vector.broadcast %13 : f32 to vector<2x128xf32>
    %603 = arith.mulf %602, %533 : vector<2x128xf32>
    %604 = arith.addf %601, %603 : vector<2x128xf32>
    %605 = vector.broadcast %14 : f32 to vector<2x128xf32>
    %606 = arith.mulf %605, %546 : vector<2x128xf32>
    %607 = arith.addf %604, %606 : vector<2x128xf32>
    %608 = vector.broadcast %15 : f32 to vector<2x128xf32>
    %609 = arith.mulf %608, %559 : vector<2x128xf32>
    %610 = arith.addf %607, %609 : vector<2x128xf32>
    %611 = math.tanh %610 : vector<2x128xf32>
    %c11_i32 = arith.constant 11 : i32
    %612 = vector.broadcast %0 : f32 to vector<2x128xf32>
    %613 = arith.mulf %612, %572 : vector<2x128xf32>
    %614 = arith.addf %23, %613 : vector<2x128xf32>
    %615 = vector.broadcast %1 : f32 to vector<2x128xf32>
    %616 = arith.mulf %615, %585 : vector<2x128xf32>
    %617 = arith.addf %614, %616 : vector<2x128xf32>
    %618 = vector.broadcast %2 : f32 to vector<2x128xf32>
    %619 = arith.mulf %618, %598 : vector<2x128xf32>
    %620 = arith.addf %617, %619 : vector<2x128xf32>
    %621 = vector.broadcast %3 : f32 to vector<2x128xf32>
    %622 = arith.mulf %621, %611 : vector<2x128xf32>
    %623 = arith.addf %620, %622 : vector<2x128xf32>
    %624 = math.tanh %623 : vector<2x128xf32>
    %625 = vector.broadcast %4 : f32 to vector<2x128xf32>
    %626 = arith.mulf %625, %572 : vector<2x128xf32>
    %627 = arith.addf %27, %626 : vector<2x128xf32>
    %628 = vector.broadcast %5 : f32 to vector<2x128xf32>
    %629 = arith.mulf %628, %585 : vector<2x128xf32>
    %630 = arith.addf %627, %629 : vector<2x128xf32>
    %631 = vector.broadcast %6 : f32 to vector<2x128xf32>
    %632 = arith.mulf %631, %598 : vector<2x128xf32>
    %633 = arith.addf %630, %632 : vector<2x128xf32>
    %634 = vector.broadcast %7 : f32 to vector<2x128xf32>
    %635 = arith.mulf %634, %611 : vector<2x128xf32>
    %636 = arith.addf %633, %635 : vector<2x128xf32>
    %637 = math.tanh %636 : vector<2x128xf32>
    %638 = vector.broadcast %8 : f32 to vector<2x128xf32>
    %639 = arith.mulf %638, %572 : vector<2x128xf32>
    %640 = arith.addf %31, %639 : vector<2x128xf32>
    %641 = vector.broadcast %9 : f32 to vector<2x128xf32>
    %642 = arith.mulf %641, %585 : vector<2x128xf32>
    %643 = arith.addf %640, %642 : vector<2x128xf32>
    %644 = vector.broadcast %10 : f32 to vector<2x128xf32>
    %645 = arith.mulf %644, %598 : vector<2x128xf32>
    %646 = arith.addf %643, %645 : vector<2x128xf32>
    %647 = vector.broadcast %11 : f32 to vector<2x128xf32>
    %648 = arith.mulf %647, %611 : vector<2x128xf32>
    %649 = arith.addf %646, %648 : vector<2x128xf32>
    %650 = math.tanh %649 : vector<2x128xf32>
    %651 = vector.broadcast %12 : f32 to vector<2x128xf32>
    %652 = arith.mulf %651, %572 : vector<2x128xf32>
    %653 = arith.addf %35, %652 : vector<2x128xf32>
    %654 = vector.broadcast %13 : f32 to vector<2x128xf32>
    %655 = arith.mulf %654, %585 : vector<2x128xf32>
    %656 = arith.addf %653, %655 : vector<2x128xf32>
    %657 = vector.broadcast %14 : f32 to vector<2x128xf32>
    %658 = arith.mulf %657, %598 : vector<2x128xf32>
    %659 = arith.addf %656, %658 : vector<2x128xf32>
    %660 = vector.broadcast %15 : f32 to vector<2x128xf32>
    %661 = arith.mulf %660, %611 : vector<2x128xf32>
    %662 = arith.addf %659, %661 : vector<2x128xf32>
    %663 = math.tanh %662 : vector<2x128xf32>
    %c12_i32 = arith.constant 12 : i32
    %664 = vector.broadcast %0 : f32 to vector<2x128xf32>
    %665 = arith.mulf %664, %624 : vector<2x128xf32>
    %666 = arith.addf %23, %665 : vector<2x128xf32>
    %667 = vector.broadcast %1 : f32 to vector<2x128xf32>
    %668 = arith.mulf %667, %637 : vector<2x128xf32>
    %669 = arith.addf %666, %668 : vector<2x128xf32>
    %670 = vector.broadcast %2 : f32 to vector<2x128xf32>
    %671 = arith.mulf %670, %650 : vector<2x128xf32>
    %672 = arith.addf %669, %671 : vector<2x128xf32>
    %673 = vector.broadcast %3 : f32 to vector<2x128xf32>
    %674 = arith.mulf %673, %663 : vector<2x128xf32>
    %675 = arith.addf %672, %674 : vector<2x128xf32>
    %676 = math.tanh %675 : vector<2x128xf32>
    %677 = vector.broadcast %4 : f32 to vector<2x128xf32>
    %678 = arith.mulf %677, %624 : vector<2x128xf32>
    %679 = arith.addf %27, %678 : vector<2x128xf32>
    %680 = vector.broadcast %5 : f32 to vector<2x128xf32>
    %681 = arith.mulf %680, %637 : vector<2x128xf32>
    %682 = arith.addf %679, %681 : vector<2x128xf32>
    %683 = vector.broadcast %6 : f32 to vector<2x128xf32>
    %684 = arith.mulf %683, %650 : vector<2x128xf32>
    %685 = arith.addf %682, %684 : vector<2x128xf32>
    %686 = vector.broadcast %7 : f32 to vector<2x128xf32>
    %687 = arith.mulf %686, %663 : vector<2x128xf32>
    %688 = arith.addf %685, %687 : vector<2x128xf32>
    %689 = math.tanh %688 : vector<2x128xf32>
    %690 = vector.broadcast %8 : f32 to vector<2x128xf32>
    %691 = arith.mulf %690, %624 : vector<2x128xf32>
    %692 = arith.addf %31, %691 : vector<2x128xf32>
    %693 = vector.broadcast %9 : f32 to vector<2x128xf32>
    %694 = arith.mulf %693, %637 : vector<2x128xf32>
    %695 = arith.addf %692, %694 : vector<2x128xf32>
    %696 = vector.broadcast %10 : f32 to vector<2x128xf32>
    %697 = arith.mulf %696, %650 : vector<2x128xf32>
    %698 = arith.addf %695, %697 : vector<2x128xf32>
    %699 = vector.broadcast %11 : f32 to vector<2x128xf32>
    %700 = arith.mulf %699, %663 : vector<2x128xf32>
    %701 = arith.addf %698, %700 : vector<2x128xf32>
    %702 = math.tanh %701 : vector<2x128xf32>
    %703 = vector.broadcast %12 : f32 to vector<2x128xf32>
    %704 = arith.mulf %703, %624 : vector<2x128xf32>
    %705 = arith.addf %35, %704 : vector<2x128xf32>
    %706 = vector.broadcast %13 : f32 to vector<2x128xf32>
    %707 = arith.mulf %706, %637 : vector<2x128xf32>
    %708 = arith.addf %705, %707 : vector<2x128xf32>
    %709 = vector.broadcast %14 : f32 to vector<2x128xf32>
    %710 = arith.mulf %709, %650 : vector<2x128xf32>
    %711 = arith.addf %708, %710 : vector<2x128xf32>
    %712 = vector.broadcast %15 : f32 to vector<2x128xf32>
    %713 = arith.mulf %712, %663 : vector<2x128xf32>
    %714 = arith.addf %711, %713 : vector<2x128xf32>
    %715 = math.tanh %714 : vector<2x128xf32>
    %c13_i32 = arith.constant 13 : i32
    %716 = vector.broadcast %0 : f32 to vector<2x128xf32>
    %717 = arith.mulf %716, %676 : vector<2x128xf32>
    %718 = arith.addf %23, %717 : vector<2x128xf32>
    %719 = vector.broadcast %1 : f32 to vector<2x128xf32>
    %720 = arith.mulf %719, %689 : vector<2x128xf32>
    %721 = arith.addf %718, %720 : vector<2x128xf32>
    %722 = vector.broadcast %2 : f32 to vector<2x128xf32>
    %723 = arith.mulf %722, %702 : vector<2x128xf32>
    %724 = arith.addf %721, %723 : vector<2x128xf32>
    %725 = vector.broadcast %3 : f32 to vector<2x128xf32>
    %726 = arith.mulf %725, %715 : vector<2x128xf32>
    %727 = arith.addf %724, %726 : vector<2x128xf32>
    %728 = math.tanh %727 : vector<2x128xf32>
    %729 = vector.broadcast %4 : f32 to vector<2x128xf32>
    %730 = arith.mulf %729, %676 : vector<2x128xf32>
    %731 = arith.addf %27, %730 : vector<2x128xf32>
    %732 = vector.broadcast %5 : f32 to vector<2x128xf32>
    %733 = arith.mulf %732, %689 : vector<2x128xf32>
    %734 = arith.addf %731, %733 : vector<2x128xf32>
    %735 = vector.broadcast %6 : f32 to vector<2x128xf32>
    %736 = arith.mulf %735, %702 : vector<2x128xf32>
    %737 = arith.addf %734, %736 : vector<2x128xf32>
    %738 = vector.broadcast %7 : f32 to vector<2x128xf32>
    %739 = arith.mulf %738, %715 : vector<2x128xf32>
    %740 = arith.addf %737, %739 : vector<2x128xf32>
    %741 = math.tanh %740 : vector<2x128xf32>
    %742 = vector.broadcast %8 : f32 to vector<2x128xf32>
    %743 = arith.mulf %742, %676 : vector<2x128xf32>
    %744 = arith.addf %31, %743 : vector<2x128xf32>
    %745 = vector.broadcast %9 : f32 to vector<2x128xf32>
    %746 = arith.mulf %745, %689 : vector<2x128xf32>
    %747 = arith.addf %744, %746 : vector<2x128xf32>
    %748 = vector.broadcast %10 : f32 to vector<2x128xf32>
    %749 = arith.mulf %748, %702 : vector<2x128xf32>
    %750 = arith.addf %747, %749 : vector<2x128xf32>
    %751 = vector.broadcast %11 : f32 to vector<2x128xf32>
    %752 = arith.mulf %751, %715 : vector<2x128xf32>
    %753 = arith.addf %750, %752 : vector<2x128xf32>
    %754 = math.tanh %753 : vector<2x128xf32>
    %755 = vector.broadcast %12 : f32 to vector<2x128xf32>
    %756 = arith.mulf %755, %676 : vector<2x128xf32>
    %757 = arith.addf %35, %756 : vector<2x128xf32>
    %758 = vector.broadcast %13 : f32 to vector<2x128xf32>
    %759 = arith.mulf %758, %689 : vector<2x128xf32>
    %760 = arith.addf %757, %759 : vector<2x128xf32>
    %761 = vector.broadcast %14 : f32 to vector<2x128xf32>
    %762 = arith.mulf %761, %702 : vector<2x128xf32>
    %763 = arith.addf %760, %762 : vector<2x128xf32>
    %764 = vector.broadcast %15 : f32 to vector<2x128xf32>
    %765 = arith.mulf %764, %715 : vector<2x128xf32>
    %766 = arith.addf %763, %765 : vector<2x128xf32>
    %767 = math.tanh %766 : vector<2x128xf32>
    %c14_i32 = arith.constant 14 : i32
    %768 = vector.broadcast %0 : f32 to vector<2x128xf32>
    %769 = arith.mulf %768, %728 : vector<2x128xf32>
    %770 = arith.addf %23, %769 : vector<2x128xf32>
    %771 = vector.broadcast %1 : f32 to vector<2x128xf32>
    %772 = arith.mulf %771, %741 : vector<2x128xf32>
    %773 = arith.addf %770, %772 : vector<2x128xf32>
    %774 = vector.broadcast %2 : f32 to vector<2x128xf32>
    %775 = arith.mulf %774, %754 : vector<2x128xf32>
    %776 = arith.addf %773, %775 : vector<2x128xf32>
    %777 = vector.broadcast %3 : f32 to vector<2x128xf32>
    %778 = arith.mulf %777, %767 : vector<2x128xf32>
    %779 = arith.addf %776, %778 : vector<2x128xf32>
    %780 = math.tanh %779 : vector<2x128xf32>
    %781 = vector.broadcast %4 : f32 to vector<2x128xf32>
    %782 = arith.mulf %781, %728 : vector<2x128xf32>
    %783 = arith.addf %27, %782 : vector<2x128xf32>
    %784 = vector.broadcast %5 : f32 to vector<2x128xf32>
    %785 = arith.mulf %784, %741 : vector<2x128xf32>
    %786 = arith.addf %783, %785 : vector<2x128xf32>
    %787 = vector.broadcast %6 : f32 to vector<2x128xf32>
    %788 = arith.mulf %787, %754 : vector<2x128xf32>
    %789 = arith.addf %786, %788 : vector<2x128xf32>
    %790 = vector.broadcast %7 : f32 to vector<2x128xf32>
    %791 = arith.mulf %790, %767 : vector<2x128xf32>
    %792 = arith.addf %789, %791 : vector<2x128xf32>
    %793 = math.tanh %792 : vector<2x128xf32>
    %794 = vector.broadcast %8 : f32 to vector<2x128xf32>
    %795 = arith.mulf %794, %728 : vector<2x128xf32>
    %796 = arith.addf %31, %795 : vector<2x128xf32>
    %797 = vector.broadcast %9 : f32 to vector<2x128xf32>
    %798 = arith.mulf %797, %741 : vector<2x128xf32>
    %799 = arith.addf %796, %798 : vector<2x128xf32>
    %800 = vector.broadcast %10 : f32 to vector<2x128xf32>
    %801 = arith.mulf %800, %754 : vector<2x128xf32>
    %802 = arith.addf %799, %801 : vector<2x128xf32>
    %803 = vector.broadcast %11 : f32 to vector<2x128xf32>
    %804 = arith.mulf %803, %767 : vector<2x128xf32>
    %805 = arith.addf %802, %804 : vector<2x128xf32>
    %806 = math.tanh %805 : vector<2x128xf32>
    %807 = vector.broadcast %12 : f32 to vector<2x128xf32>
    %808 = arith.mulf %807, %728 : vector<2x128xf32>
    %809 = arith.addf %35, %808 : vector<2x128xf32>
    %810 = vector.broadcast %13 : f32 to vector<2x128xf32>
    %811 = arith.mulf %810, %741 : vector<2x128xf32>
    %812 = arith.addf %809, %811 : vector<2x128xf32>
    %813 = vector.broadcast %14 : f32 to vector<2x128xf32>
    %814 = arith.mulf %813, %754 : vector<2x128xf32>
    %815 = arith.addf %812, %814 : vector<2x128xf32>
    %816 = vector.broadcast %15 : f32 to vector<2x128xf32>
    %817 = arith.mulf %816, %767 : vector<2x128xf32>
    %818 = arith.addf %815, %817 : vector<2x128xf32>
    %819 = math.tanh %818 : vector<2x128xf32>
    %c15_i32 = arith.constant 15 : i32
    %820 = vector.broadcast %0 : f32 to vector<2x128xf32>
    %821 = arith.mulf %820, %780 : vector<2x128xf32>
    %822 = arith.addf %23, %821 : vector<2x128xf32>
    %823 = vector.broadcast %1 : f32 to vector<2x128xf32>
    %824 = arith.mulf %823, %793 : vector<2x128xf32>
    %825 = arith.addf %822, %824 : vector<2x128xf32>
    %826 = vector.broadcast %2 : f32 to vector<2x128xf32>
    %827 = arith.mulf %826, %806 : vector<2x128xf32>
    %828 = arith.addf %825, %827 : vector<2x128xf32>
    %829 = vector.broadcast %3 : f32 to vector<2x128xf32>
    %830 = arith.mulf %829, %819 : vector<2x128xf32>
    %831 = arith.addf %828, %830 : vector<2x128xf32>
    %832 = math.tanh %831 : vector<2x128xf32>
    %833 = vector.broadcast %4 : f32 to vector<2x128xf32>
    %834 = arith.mulf %833, %780 : vector<2x128xf32>
    %835 = arith.addf %27, %834 : vector<2x128xf32>
    %836 = vector.broadcast %5 : f32 to vector<2x128xf32>
    %837 = arith.mulf %836, %793 : vector<2x128xf32>
    %838 = arith.addf %835, %837 : vector<2x128xf32>
    %839 = vector.broadcast %6 : f32 to vector<2x128xf32>
    %840 = arith.mulf %839, %806 : vector<2x128xf32>
    %841 = arith.addf %838, %840 : vector<2x128xf32>
    %842 = vector.broadcast %7 : f32 to vector<2x128xf32>
    %843 = arith.mulf %842, %819 : vector<2x128xf32>
    %844 = arith.addf %841, %843 : vector<2x128xf32>
    %845 = math.tanh %844 : vector<2x128xf32>
    %846 = vector.broadcast %8 : f32 to vector<2x128xf32>
    %847 = arith.mulf %846, %780 : vector<2x128xf32>
    %848 = arith.addf %31, %847 : vector<2x128xf32>
    %849 = vector.broadcast %9 : f32 to vector<2x128xf32>
    %850 = arith.mulf %849, %793 : vector<2x128xf32>
    %851 = arith.addf %848, %850 : vector<2x128xf32>
    %852 = vector.broadcast %10 : f32 to vector<2x128xf32>
    %853 = arith.mulf %852, %806 : vector<2x128xf32>
    %854 = arith.addf %851, %853 : vector<2x128xf32>
    %855 = vector.broadcast %11 : f32 to vector<2x128xf32>
    %856 = arith.mulf %855, %819 : vector<2x128xf32>
    %857 = arith.addf %854, %856 : vector<2x128xf32>
    %858 = math.tanh %857 : vector<2x128xf32>
    %859 = vector.broadcast %12 : f32 to vector<2x128xf32>
    %860 = arith.mulf %859, %780 : vector<2x128xf32>
    %861 = arith.addf %35, %860 : vector<2x128xf32>
    %862 = vector.broadcast %13 : f32 to vector<2x128xf32>
    %863 = arith.mulf %862, %793 : vector<2x128xf32>
    %864 = arith.addf %861, %863 : vector<2x128xf32>
    %865 = vector.broadcast %14 : f32 to vector<2x128xf32>
    %866 = arith.mulf %865, %806 : vector<2x128xf32>
    %867 = arith.addf %864, %866 : vector<2x128xf32>
    %868 = vector.broadcast %15 : f32 to vector<2x128xf32>
    %869 = arith.mulf %868, %819 : vector<2x128xf32>
    %870 = arith.addf %867, %869 : vector<2x128xf32>
    %871 = math.tanh %870 : vector<2x128xf32>
    %c16_i32 = arith.constant 16 : i32
    %872 = vector.broadcast %0 : f32 to vector<2x128xf32>
    %873 = arith.mulf %872, %832 : vector<2x128xf32>
    %874 = arith.addf %23, %873 : vector<2x128xf32>
    %875 = vector.broadcast %1 : f32 to vector<2x128xf32>
    %876 = arith.mulf %875, %845 : vector<2x128xf32>
    %877 = arith.addf %874, %876 : vector<2x128xf32>
    %878 = vector.broadcast %2 : f32 to vector<2x128xf32>
    %879 = arith.mulf %878, %858 : vector<2x128xf32>
    %880 = arith.addf %877, %879 : vector<2x128xf32>
    %881 = vector.broadcast %3 : f32 to vector<2x128xf32>
    %882 = arith.mulf %881, %871 : vector<2x128xf32>
    %883 = arith.addf %880, %882 : vector<2x128xf32>
    %884 = math.tanh %883 : vector<2x128xf32>
    %885 = vector.broadcast %4 : f32 to vector<2x128xf32>
    %886 = arith.mulf %885, %832 : vector<2x128xf32>
    %887 = arith.addf %27, %886 : vector<2x128xf32>
    %888 = vector.broadcast %5 : f32 to vector<2x128xf32>
    %889 = arith.mulf %888, %845 : vector<2x128xf32>
    %890 = arith.addf %887, %889 : vector<2x128xf32>
    %891 = vector.broadcast %6 : f32 to vector<2x128xf32>
    %892 = arith.mulf %891, %858 : vector<2x128xf32>
    %893 = arith.addf %890, %892 : vector<2x128xf32>
    %894 = vector.broadcast %7 : f32 to vector<2x128xf32>
    %895 = arith.mulf %894, %871 : vector<2x128xf32>
    %896 = arith.addf %893, %895 : vector<2x128xf32>
    %897 = math.tanh %896 : vector<2x128xf32>
    %898 = vector.broadcast %8 : f32 to vector<2x128xf32>
    %899 = arith.mulf %898, %832 : vector<2x128xf32>
    %900 = arith.addf %31, %899 : vector<2x128xf32>
    %901 = vector.broadcast %9 : f32 to vector<2x128xf32>
    %902 = arith.mulf %901, %845 : vector<2x128xf32>
    %903 = arith.addf %900, %902 : vector<2x128xf32>
    %904 = vector.broadcast %10 : f32 to vector<2x128xf32>
    %905 = arith.mulf %904, %858 : vector<2x128xf32>
    %906 = arith.addf %903, %905 : vector<2x128xf32>
    %907 = vector.broadcast %11 : f32 to vector<2x128xf32>
    %908 = arith.mulf %907, %871 : vector<2x128xf32>
    %909 = arith.addf %906, %908 : vector<2x128xf32>
    %910 = math.tanh %909 : vector<2x128xf32>
    %911 = vector.broadcast %12 : f32 to vector<2x128xf32>
    %912 = arith.mulf %911, %832 : vector<2x128xf32>
    %913 = arith.addf %35, %912 : vector<2x128xf32>
    %914 = vector.broadcast %13 : f32 to vector<2x128xf32>
    %915 = arith.mulf %914, %845 : vector<2x128xf32>
    %916 = arith.addf %913, %915 : vector<2x128xf32>
    %917 = vector.broadcast %14 : f32 to vector<2x128xf32>
    %918 = arith.mulf %917, %858 : vector<2x128xf32>
    %919 = arith.addf %916, %918 : vector<2x128xf32>
    %920 = vector.broadcast %15 : f32 to vector<2x128xf32>
    %921 = arith.mulf %920, %871 : vector<2x128xf32>
    %922 = arith.addf %919, %921 : vector<2x128xf32>
    %923 = math.tanh %922 : vector<2x128xf32>
    %c17_i32 = arith.constant 17 : i32
    %924 = vector.broadcast %0 : f32 to vector<2x128xf32>
    %925 = arith.mulf %924, %884 : vector<2x128xf32>
    %926 = arith.addf %23, %925 : vector<2x128xf32>
    %927 = vector.broadcast %1 : f32 to vector<2x128xf32>
    %928 = arith.mulf %927, %897 : vector<2x128xf32>
    %929 = arith.addf %926, %928 : vector<2x128xf32>
    %930 = vector.broadcast %2 : f32 to vector<2x128xf32>
    %931 = arith.mulf %930, %910 : vector<2x128xf32>
    %932 = arith.addf %929, %931 : vector<2x128xf32>
    %933 = vector.broadcast %3 : f32 to vector<2x128xf32>
    %934 = arith.mulf %933, %923 : vector<2x128xf32>
    %935 = arith.addf %932, %934 : vector<2x128xf32>
    %936 = math.tanh %935 : vector<2x128xf32>
    %937 = vector.broadcast %4 : f32 to vector<2x128xf32>
    %938 = arith.mulf %937, %884 : vector<2x128xf32>
    %939 = arith.addf %27, %938 : vector<2x128xf32>
    %940 = vector.broadcast %5 : f32 to vector<2x128xf32>
    %941 = arith.mulf %940, %897 : vector<2x128xf32>
    %942 = arith.addf %939, %941 : vector<2x128xf32>
    %943 = vector.broadcast %6 : f32 to vector<2x128xf32>
    %944 = arith.mulf %943, %910 : vector<2x128xf32>
    %945 = arith.addf %942, %944 : vector<2x128xf32>
    %946 = vector.broadcast %7 : f32 to vector<2x128xf32>
    %947 = arith.mulf %946, %923 : vector<2x128xf32>
    %948 = arith.addf %945, %947 : vector<2x128xf32>
    %949 = math.tanh %948 : vector<2x128xf32>
    %950 = vector.broadcast %8 : f32 to vector<2x128xf32>
    %951 = arith.mulf %950, %884 : vector<2x128xf32>
    %952 = arith.addf %31, %951 : vector<2x128xf32>
    %953 = vector.broadcast %9 : f32 to vector<2x128xf32>
    %954 = arith.mulf %953, %897 : vector<2x128xf32>
    %955 = arith.addf %952, %954 : vector<2x128xf32>
    %956 = vector.broadcast %10 : f32 to vector<2x128xf32>
    %957 = arith.mulf %956, %910 : vector<2x128xf32>
    %958 = arith.addf %955, %957 : vector<2x128xf32>
    %959 = vector.broadcast %11 : f32 to vector<2x128xf32>
    %960 = arith.mulf %959, %923 : vector<2x128xf32>
    %961 = arith.addf %958, %960 : vector<2x128xf32>
    %962 = math.tanh %961 : vector<2x128xf32>
    %963 = vector.broadcast %12 : f32 to vector<2x128xf32>
    %964 = arith.mulf %963, %884 : vector<2x128xf32>
    %965 = arith.addf %35, %964 : vector<2x128xf32>
    %966 = vector.broadcast %13 : f32 to vector<2x128xf32>
    %967 = arith.mulf %966, %897 : vector<2x128xf32>
    %968 = arith.addf %965, %967 : vector<2x128xf32>
    %969 = vector.broadcast %14 : f32 to vector<2x128xf32>
    %970 = arith.mulf %969, %910 : vector<2x128xf32>
    %971 = arith.addf %968, %970 : vector<2x128xf32>
    %972 = vector.broadcast %15 : f32 to vector<2x128xf32>
    %973 = arith.mulf %972, %923 : vector<2x128xf32>
    %974 = arith.addf %971, %973 : vector<2x128xf32>
    %975 = math.tanh %974 : vector<2x128xf32>
    %c18_i32 = arith.constant 18 : i32
    %976 = vector.broadcast %0 : f32 to vector<2x128xf32>
    %977 = arith.mulf %976, %936 : vector<2x128xf32>
    %978 = arith.addf %23, %977 : vector<2x128xf32>
    %979 = vector.broadcast %1 : f32 to vector<2x128xf32>
    %980 = arith.mulf %979, %949 : vector<2x128xf32>
    %981 = arith.addf %978, %980 : vector<2x128xf32>
    %982 = vector.broadcast %2 : f32 to vector<2x128xf32>
    %983 = arith.mulf %982, %962 : vector<2x128xf32>
    %984 = arith.addf %981, %983 : vector<2x128xf32>
    %985 = vector.broadcast %3 : f32 to vector<2x128xf32>
    %986 = arith.mulf %985, %975 : vector<2x128xf32>
    %987 = arith.addf %984, %986 : vector<2x128xf32>
    %988 = math.tanh %987 : vector<2x128xf32>
    %989 = vector.broadcast %4 : f32 to vector<2x128xf32>
    %990 = arith.mulf %989, %936 : vector<2x128xf32>
    %991 = arith.addf %27, %990 : vector<2x128xf32>
    %992 = vector.broadcast %5 : f32 to vector<2x128xf32>
    %993 = arith.mulf %992, %949 : vector<2x128xf32>
    %994 = arith.addf %991, %993 : vector<2x128xf32>
    %995 = vector.broadcast %6 : f32 to vector<2x128xf32>
    %996 = arith.mulf %995, %962 : vector<2x128xf32>
    %997 = arith.addf %994, %996 : vector<2x128xf32>
    %998 = vector.broadcast %7 : f32 to vector<2x128xf32>
    %999 = arith.mulf %998, %975 : vector<2x128xf32>
    %1000 = arith.addf %997, %999 : vector<2x128xf32>
    %1001 = math.tanh %1000 : vector<2x128xf32>
    %1002 = vector.broadcast %8 : f32 to vector<2x128xf32>
    %1003 = arith.mulf %1002, %936 : vector<2x128xf32>
    %1004 = arith.addf %31, %1003 : vector<2x128xf32>
    %1005 = vector.broadcast %9 : f32 to vector<2x128xf32>
    %1006 = arith.mulf %1005, %949 : vector<2x128xf32>
    %1007 = arith.addf %1004, %1006 : vector<2x128xf32>
    %1008 = vector.broadcast %10 : f32 to vector<2x128xf32>
    %1009 = arith.mulf %1008, %962 : vector<2x128xf32>
    %1010 = arith.addf %1007, %1009 : vector<2x128xf32>
    %1011 = vector.broadcast %11 : f32 to vector<2x128xf32>
    %1012 = arith.mulf %1011, %975 : vector<2x128xf32>
    %1013 = arith.addf %1010, %1012 : vector<2x128xf32>
    %1014 = math.tanh %1013 : vector<2x128xf32>
    %1015 = vector.broadcast %12 : f32 to vector<2x128xf32>
    %1016 = arith.mulf %1015, %936 : vector<2x128xf32>
    %1017 = arith.addf %35, %1016 : vector<2x128xf32>
    %1018 = vector.broadcast %13 : f32 to vector<2x128xf32>
    %1019 = arith.mulf %1018, %949 : vector<2x128xf32>
    %1020 = arith.addf %1017, %1019 : vector<2x128xf32>
    %1021 = vector.broadcast %14 : f32 to vector<2x128xf32>
    %1022 = arith.mulf %1021, %962 : vector<2x128xf32>
    %1023 = arith.addf %1020, %1022 : vector<2x128xf32>
    %1024 = vector.broadcast %15 : f32 to vector<2x128xf32>
    %1025 = arith.mulf %1024, %975 : vector<2x128xf32>
    %1026 = arith.addf %1023, %1025 : vector<2x128xf32>
    %1027 = math.tanh %1026 : vector<2x128xf32>
    %c19_i32 = arith.constant 19 : i32
    %1028 = vector.broadcast %0 : f32 to vector<2x128xf32>
    %1029 = arith.mulf %1028, %988 : vector<2x128xf32>
    %1030 = arith.addf %23, %1029 : vector<2x128xf32>
    %1031 = vector.broadcast %1 : f32 to vector<2x128xf32>
    %1032 = arith.mulf %1031, %1001 : vector<2x128xf32>
    %1033 = arith.addf %1030, %1032 : vector<2x128xf32>
    %1034 = vector.broadcast %2 : f32 to vector<2x128xf32>
    %1035 = arith.mulf %1034, %1014 : vector<2x128xf32>
    %1036 = arith.addf %1033, %1035 : vector<2x128xf32>
    %1037 = vector.broadcast %3 : f32 to vector<2x128xf32>
    %1038 = arith.mulf %1037, %1027 : vector<2x128xf32>
    %1039 = arith.addf %1036, %1038 : vector<2x128xf32>
    %1040 = math.tanh %1039 : vector<2x128xf32>
    %1041 = vector.broadcast %4 : f32 to vector<2x128xf32>
    %1042 = arith.mulf %1041, %988 : vector<2x128xf32>
    %1043 = arith.addf %27, %1042 : vector<2x128xf32>
    %1044 = vector.broadcast %5 : f32 to vector<2x128xf32>
    %1045 = arith.mulf %1044, %1001 : vector<2x128xf32>
    %1046 = arith.addf %1043, %1045 : vector<2x128xf32>
    %1047 = vector.broadcast %6 : f32 to vector<2x128xf32>
    %1048 = arith.mulf %1047, %1014 : vector<2x128xf32>
    %1049 = arith.addf %1046, %1048 : vector<2x128xf32>
    %1050 = vector.broadcast %7 : f32 to vector<2x128xf32>
    %1051 = arith.mulf %1050, %1027 : vector<2x128xf32>
    %1052 = arith.addf %1049, %1051 : vector<2x128xf32>
    %1053 = math.tanh %1052 : vector<2x128xf32>
    %1054 = vector.broadcast %8 : f32 to vector<2x128xf32>
    %1055 = arith.mulf %1054, %988 : vector<2x128xf32>
    %1056 = arith.addf %31, %1055 : vector<2x128xf32>
    %1057 = vector.broadcast %9 : f32 to vector<2x128xf32>
    %1058 = arith.mulf %1057, %1001 : vector<2x128xf32>
    %1059 = arith.addf %1056, %1058 : vector<2x128xf32>
    %1060 = vector.broadcast %10 : f32 to vector<2x128xf32>
    %1061 = arith.mulf %1060, %1014 : vector<2x128xf32>
    %1062 = arith.addf %1059, %1061 : vector<2x128xf32>
    %1063 = vector.broadcast %11 : f32 to vector<2x128xf32>
    %1064 = arith.mulf %1063, %1027 : vector<2x128xf32>
    %1065 = arith.addf %1062, %1064 : vector<2x128xf32>
    %1066 = math.tanh %1065 : vector<2x128xf32>
    %1067 = vector.broadcast %12 : f32 to vector<2x128xf32>
    %1068 = arith.mulf %1067, %988 : vector<2x128xf32>
    %1069 = arith.addf %35, %1068 : vector<2x128xf32>
    %1070 = vector.broadcast %13 : f32 to vector<2x128xf32>
    %1071 = arith.mulf %1070, %1001 : vector<2x128xf32>
    %1072 = arith.addf %1069, %1071 : vector<2x128xf32>
    %1073 = vector.broadcast %14 : f32 to vector<2x128xf32>
    %1074 = arith.mulf %1073, %1014 : vector<2x128xf32>
    %1075 = arith.addf %1072, %1074 : vector<2x128xf32>
    %1076 = vector.broadcast %15 : f32 to vector<2x128xf32>
    %1077 = arith.mulf %1076, %1027 : vector<2x128xf32>
    %1078 = arith.addf %1075, %1077 : vector<2x128xf32>
    %1079 = math.tanh %1078 : vector<2x128xf32>
    %c20_i32 = arith.constant 20 : i32
    %1080 = vector.broadcast %0 : f32 to vector<2x128xf32>
    %1081 = arith.mulf %1080, %1040 : vector<2x128xf32>
    %1082 = arith.addf %23, %1081 : vector<2x128xf32>
    %1083 = vector.broadcast %1 : f32 to vector<2x128xf32>
    %1084 = arith.mulf %1083, %1053 : vector<2x128xf32>
    %1085 = arith.addf %1082, %1084 : vector<2x128xf32>
    %1086 = vector.broadcast %2 : f32 to vector<2x128xf32>
    %1087 = arith.mulf %1086, %1066 : vector<2x128xf32>
    %1088 = arith.addf %1085, %1087 : vector<2x128xf32>
    %1089 = vector.broadcast %3 : f32 to vector<2x128xf32>
    %1090 = arith.mulf %1089, %1079 : vector<2x128xf32>
    %1091 = arith.addf %1088, %1090 : vector<2x128xf32>
    %1092 = math.tanh %1091 : vector<2x128xf32>
    %1093 = vector.broadcast %4 : f32 to vector<2x128xf32>
    %1094 = arith.mulf %1093, %1040 : vector<2x128xf32>
    %1095 = arith.addf %27, %1094 : vector<2x128xf32>
    %1096 = vector.broadcast %5 : f32 to vector<2x128xf32>
    %1097 = arith.mulf %1096, %1053 : vector<2x128xf32>
    %1098 = arith.addf %1095, %1097 : vector<2x128xf32>
    %1099 = vector.broadcast %6 : f32 to vector<2x128xf32>
    %1100 = arith.mulf %1099, %1066 : vector<2x128xf32>
    %1101 = arith.addf %1098, %1100 : vector<2x128xf32>
    %1102 = vector.broadcast %7 : f32 to vector<2x128xf32>
    %1103 = arith.mulf %1102, %1079 : vector<2x128xf32>
    %1104 = arith.addf %1101, %1103 : vector<2x128xf32>
    %1105 = math.tanh %1104 : vector<2x128xf32>
    %1106 = vector.broadcast %8 : f32 to vector<2x128xf32>
    %1107 = arith.mulf %1106, %1040 : vector<2x128xf32>
    %1108 = arith.addf %31, %1107 : vector<2x128xf32>
    %1109 = vector.broadcast %9 : f32 to vector<2x128xf32>
    %1110 = arith.mulf %1109, %1053 : vector<2x128xf32>
    %1111 = arith.addf %1108, %1110 : vector<2x128xf32>
    %1112 = vector.broadcast %10 : f32 to vector<2x128xf32>
    %1113 = arith.mulf %1112, %1066 : vector<2x128xf32>
    %1114 = arith.addf %1111, %1113 : vector<2x128xf32>
    %1115 = vector.broadcast %11 : f32 to vector<2x128xf32>
    %1116 = arith.mulf %1115, %1079 : vector<2x128xf32>
    %1117 = arith.addf %1114, %1116 : vector<2x128xf32>
    %1118 = math.tanh %1117 : vector<2x128xf32>
    %1119 = vector.broadcast %12 : f32 to vector<2x128xf32>
    %1120 = arith.mulf %1119, %1040 : vector<2x128xf32>
    %1121 = arith.addf %35, %1120 : vector<2x128xf32>
    %1122 = vector.broadcast %13 : f32 to vector<2x128xf32>
    %1123 = arith.mulf %1122, %1053 : vector<2x128xf32>
    %1124 = arith.addf %1121, %1123 : vector<2x128xf32>
    %1125 = vector.broadcast %14 : f32 to vector<2x128xf32>
    %1126 = arith.mulf %1125, %1066 : vector<2x128xf32>
    %1127 = arith.addf %1124, %1126 : vector<2x128xf32>
    %1128 = vector.broadcast %15 : f32 to vector<2x128xf32>
    %1129 = arith.mulf %1128, %1079 : vector<2x128xf32>
    %1130 = arith.addf %1127, %1129 : vector<2x128xf32>
    %1131 = math.tanh %1130 : vector<2x128xf32>
    %c0_51 = arith.constant 0 : index
    %c0_52 = arith.constant 0 : index
    %c0_53 = arith.constant 0 : index
    %c0_54 = arith.constant 0 : index
    %1132 = vector.load %arg5[%c0_51, %c0_52, %c0_53, %c0_54] : memref<1x4x2x128xf32, #tpu.memory_space<vmem>>, vector<1x1x2x128xf32>
    %1133 = vector.shape_cast %1132 : vector<1x1x2x128xf32> to vector<2x128xf32>
    %1134 = vector.shape_cast %1092 : vector<2x128xf32> to vector<1x1x2x128xf32>
    tpu.vector_store %arg5[%c0_51, %c0_52, %c0_53, %c0_54], %1134 {strides = array<i32>} : memref<1x4x2x128xf32, #tpu.memory_space<vmem>>, vector<1x1x2x128xf32>,
    %c0_55 = arith.constant 0 : index
    %c1_56 = arith.constant 1 : index
    %c0_57 = arith.constant 0 : index
    %c0_58 = arith.constant 0 : index
    %1135 = vector.load %arg5[%c0_55, %c1_56, %c0_57, %c0_58] : memref<1x4x2x128xf32, #tpu.memory_space<vmem>>, vector<1x1x2x128xf32>
    %1136 = vector.shape_cast %1135 : vector<1x1x2x128xf32> to vector<2x128xf32>
    %1137 = vector.shape_cast %1105 : vector<2x128xf32> to vector<1x1x2x128xf32>
    tpu.vector_store %arg5[%c0_55, %c1_56, %c0_57, %c0_58], %1137 {strides = array<i32>} : memref<1x4x2x128xf32, #tpu.memory_space<vmem>>, vector<1x1x2x128xf32>,
    %c0_59 = arith.constant 0 : index
    %c2_60 = arith.constant 2 : index
    %c0_61 = arith.constant 0 : index
    %c0_62 = arith.constant 0 : index
    %1138 = vector.load %arg5[%c0_59, %c2_60, %c0_61, %c0_62] : memref<1x4x2x128xf32, #tpu.memory_space<vmem>>, vector<1x1x2x128xf32>
    %1139 = vector.shape_cast %1138 : vector<1x1x2x128xf32> to vector<2x128xf32>
    %1140 = vector.shape_cast %1118 : vector<2x128xf32> to vector<1x1x2x128xf32>
    tpu.vector_store %arg5[%c0_59, %c2_60, %c0_61, %c0_62], %1140 {strides = array<i32>} : memref<1x4x2x128xf32, #tpu.memory_space<vmem>>, vector<1x1x2x128xf32>,
    %c0_63 = arith.constant 0 : index
    %c3_64 = arith.constant 3 : index
    %c0_65 = arith.constant 0 : index
    %c0_66 = arith.constant 0 : index
    %1141 = vector.load %arg5[%c0_63, %c3_64, %c0_65, %c0_66] : memref<1x4x2x128xf32, #tpu.memory_space<vmem>>, vector<1x1x2x128xf32>
    %1142 = vector.shape_cast %1141 : vector<1x1x2x128xf32> to vector<2x128xf32>
    %1143 = vector.shape_cast %1131 : vector<2x128xf32> to vector<1x1x2x128xf32>
    tpu.vector_store %arg5[%c0_63, %c3_64, %c0_65, %c0_66], %1143 {strides = array<i32>} : memref<1x4x2x128xf32, #tpu.memory_space<vmem>>, vector<1x1x2x128xf32>,
    return
  }
  func.func @transform_0(%arg0: i32, %arg1: i32) -> (i32, i32, i32, i32) {
    %c0_i32 = arith.constant 0 : i32
    %c0_i32_0 = arith.constant 0 : i32
    %c0_i32_1 = arith.constant 0 : i32
    return %arg0, %c0_i32, %arg1, %c0_i32_0 : i32, i32, i32, i32
  }
  func.func @transform_1(%arg0: i32, %arg1: i32) -> (i32, i32) {
    %c0_i32 = arith.constant 0 : i32
    %c0_i32_0 = arith.constant 0 : i32
    %c0_i32_1 = arith.constant 0 : i32
    return %c0_i32, %c0_i32_0 : i32, i32
  }
  func.func @transform_2(%arg0: i32, %arg1: i32) -> i32 {
    %c0_i32 = arith.constant 0 : i32
    %c0_i32_0 = arith.constant 0 : i32
    return %c0_i32 : i32
  }
  func.func @transform_3(%arg0: i32, %arg1: i32) -> (i32, i32, i32, i32) {
    %c0_i32 = arith.constant 0 : i32
    %c0_i32_0 = arith.constant 0 : i32
    %c0_i32_1 = arith.constant 0 : i32
    return %arg0, %c0_i32, %arg1, %c0_i32_0 : i32, i32, i32, i32
  }
}

</mosaic_0001>

<bundles_post_ra>
// kernel: tpu_custom_call.1
= control target key start
LH: loop header
LB: loop body
LE: loop exit
PB: predicated region body
PF: predicated region fallthrough
CT: control target
= control target key end

     0   :  { %s2318_s0 = inlined_call_operand.hbm [shape: f32[2,4,2,128], index: 0, kind: input, shape index: {}]   ;;  %s2319_s1 = inlined_call_operand.hbm [shape: f32[4,4], index: 1, kind: input, shape index: {}]   ;;  %s2320_s2 = inlined_call_operand.vmem [shape: f32[4], index: 2, kind: input, shape index: {}]   ;;  %s2321_s3 = inlined_call_operand.hbm [shape: f32[2,4,2,128], index: 3, kind: output, shape index: {}]  }
   0x1   :  { %2326 = sst [smem:[#allocation16_spill]] %s2318_s0 }
   0x2   :  { %2327 = sst [smem:[#allocation17_spill]] %s2319_s1 }
   0x3   :  { %2328 = sst [smem:[#allocation18_spill]] %s2320_s2 }
   0x4   :  { %8 = vsyncpa [#allocation3], 0 }
   0x5   :  { %10 = vsyncpa [#allocation3 + $0x1], 0 }
   0x6   :  { %11 = vsyncpa [#allocation5], 0 }
   0x7   :  { %12 = vsyncpa [#allocation6], 0 }
   0x8   :  { %13 = vsyncpa [#allocation4], 0 }
   0x9   :  { %15 = vsyncpa [#allocation4 + $0x1], 0  ;;  %s1641_s12 = smov 0   ;;  %s1643_s13 = smov 0  }
   0xa   :  { %s1645_s14 = smov 0   ;;  %s1647_s15 = smov 0  }
   0xb   :  { %s1649_s16 = smov 0   ;;  %s1651_s17 = smov 0  }
   0xc LB: > { %2329 = sst [smem:[#allocation14_spill]] %s1607_s16  ;;  %s1169_s18 = sadd.s32 4294967295, %s1611_s17   ;;  %s1611_s17 = sphi %s1651_s17, %s21_s17   ;;  %s1607_s16 = sphi %s1649_s16, %s2346_s16   ;;  %s1603_s15 = sphi %s1647_s15, %s2345_s15   ;;  %s1599_s14 = sphi %s1645_s14, %s2349_s14   ;;  %s1595_s13 = sphi %s1643_s13, %s2348_s13   ;;  %s1591_s12 = sphi %s1641_s12, %s2347_s12  }
   0xd   : > { %s1170_s19 = sadd.s32 4294967294, %s1611_s17   ;;  %s42_s20 = sadd.s32 1, %s1599_s14 }
   0xe   : > { %p49_p0 = scmp.ne.s32.totalorder %s1599_s14, %s1595_s13  ;;  %p50_p1 = scmp.eq.s32.totalorder %s1611_s17, 0 }
   0xf   : > { %p55_p2 = scmp.ne.s32.totalorder %s1595_s13, %s1591_s12  ;;  %p1679_p3 = scmp.eq.s32.totalorder %s1169_s18, 0 }
  0x10   : > { %p123_p4 = scmp.eq.s32.totalorder %s1169_s18, 1  ;;  %p51_p5 = por %p50_p1, %p49_p0 }
  0x11   : > { %p129_p6 = scmp.eq.s32.totalorder %s1170_s19, 1  ;;  %p1685_p7 = por %p1679_p3, %p55_p2 }
  0x12   : > { %p1689_p8 = por %p123_p4, %p49_p0  ;;  %p1171_p10 = scmp.ge.s32.totalorder %s1611_s17, 1 }
  0x13   : > { %p1693_p9 = por %p129_p6, %p55_p2  ;;  %p136_p11 = scmp.lt.s32.totalorder %s1611_s17, 3 }
  0x14   : > { %s2332_s23 = scalar_select %p1689_p8, 1, 0 }
  0x15   : > { %s2333_s24 = scalar_select %p1693_p9, 1, 0 }
  0x16   : > { %p1700_p13 = pnand %p1171_p10, %p136_p11  ;;  %p1243_p1 = scmp.lt.s32.totalorder %s1611_s17, 2 }
  0x17   : > { %s2335_s2 = sld [smem:[#allocation18_spill]]  ;;  %s169_s4 = sand.u32 1, %s1599_s14  }
  0x18   : > { %p1226_p0 = pneg %p1700_p13  ;;  %p1710_p4 = pnand %p1243_p1, %p51_p5 }
  0x19   : > { %s33_s5 = sadd.s32 1, %s1607_s16  ;;  %s1613_s6 = smov [#allocation7]  }
  0x1a   : > { %p1716_p2 = pnand %p1226_p0, %p1679_p3  ;;  %s2338_s1 = sld [smem:[#allocation17_spill]] }
  0x1c   : > { %p1482_p6 = pneg %p1716_p2 }
  0x1d   : > { %s158_s28 = sshll.u32 %s2335_s2, 4  ;;  %s159_s28 = int_to_ptr.vmem [resolvable:$true] %s158_s28 }
  0x1e   : > { %s1480_s9 = scalar_lea.vmem %s159_s28, 16  ;;  %p1488_p1 = scmp.lt.s32.totalorder %s159_s28, %s159_s28 }
  0x1f   : > { %p1481_p5 = scmp.ne.s32.totalorder %s159_s28, %s1480_s9  ;;  %p1489_p0 = scmp.lt.s32.totalorder %s1480_s9, %s1480_s9 }
  0x20   : > { %1229 = dma.hbm_to_smem (!%p1716_p2), %s2338_s1, 64, %s1613_s6, [#allocation5]  }
  0x21   : > { %p1483_p10 = pnand %p1482_p6, %p1481_p5  ;;  %p1490_p12 = por %p1489_p0, %p1488_p1 }
  0x23   : > { %p1484_p11 = pneg %p1483_p10 }
  0x25   : > { %p1491_p9 = pnand %p1490_p12, %p1484_p11 }
  0x27   : > { %1494 = shalt.err (!%p1491_p9)
}
  0x28   : > { %s1614_s10 = smov [#allocation8]   ;;  %p35_p8 = scmp.ge.s32.totalorder %s33_s5, 2 }
  0x29   : > { %1232 = dma.vmem_to_smem (!%p1716_p2), %s159_s28, 16, %s1614_s10, [#allocation6]  }
  0x2a   : > { %s1175_s11 = sshll.u32 %s169_s4, 3  ;;  %s1212_s18 = sshll.u32 %s1607_s16, 7 }
  0x2b   : > { %s2351_s5 = smov (%p35_p8, %s33_s5), 0  ;;  %s2340_s0 = sld [smem:[#allocation16_spill]] }
  0x2c   : > { %2339 = sst [smem:[#allocation15_spill]] %s2351_s5  ;;  %s37_s6 = ssub.s32 %s1607_s16, %s2351_s5 }
  0x2d   : > { %s173_s7 = scalar_lea.vmem [#allocation2], %s1175_s11  ;;  %p40_p9 = scmp.eq.s32.totalorder %s37_s6, 0 }
  0x2e   : > { %s181_s8 = sshll.u32 %s173_s7, 4  ;;  %s170_s9 = scalar_lea.sflag [#allocation3], %s169_s4  ;;  %s182_s8 = int_to_ptr.vmem [resolvable:$true] %s181_s8 }
  0x2f   : > { %s1742_s30 = scalar_select %p40_p9, %s1599_s14, %s42_s20  }
  0x30   : > { %p1497_p12 = pneg %p1710_p4  ;;  %s1508_s28 = scalar_lea.vmem %s182_s8, 128 }
  0x31   : > { %s180_s27 = scalar_lea.hbm %s2340_s0, %s1212_s18  ;;  %p1509_p2 = scmp.ne.s32.totalorder %s182_s8, %s1508_s28 }
  0x32   : > { %s1615_s10 = smov [#allocation2]  }
  0x33   : > { %p1511_p8 = pnand %p1509_p2, %p1497_p12  ;;  %s1513_s1 = sshll.u32 %s1615_s10, 4  ;;  %s1514_s1 = int_to_ptr.vmem [resolvable:$false] %s1513_s1 }
  0x34   : > { %s1515_s19 = scalar_lea.vmem %s1514_s1, 256  ;;  %p1516_p6 = scmp.lt.s32.totalorder %s182_s8, %s1514_s1 }
  0x35   : > { %p1512_p5 = pneg %p1511_p8  ;;  %p1517_p10 = scmp.lt.s32.totalorder %s1515_s19, %s1508_s28 }
  0x37   : > { %p1518_p11 = por %p1517_p10, %p1516_p6 }
  0x39   : > { %p1519_p1 = pnand %p1518_p11, %p1512_p5 }
  0x3b   : > { %1522 = shalt.err (!%p1519_p1)
}
  0x3c   : > { %s1616_s11 = smov 32   ;;  %s1617_s20 = smov 2  }
  0x3d   : > { %1236 = dma.hbm_to_vmem [thread:$0]  (!%p1710_p4), %s180_s27, 128, %s182_s8, %s170_s9, %s1616_s11, %s1616_s11, %s1617_s20  }
  0x3e   : > { %193 = sbr.rel (%p1700_p13) target bundleno = 618 (0x26a), region = 32  ;;  %s1751_s4 = sand.u32 (!%p1700_p13), 1, %s1595_s13  }
  0x3f   : > { %s2323_s1 = sshll.u32 (!%p1700_p13), %s1751_s4, 3  ;;  %s196_s18 = scalar_lea.sflag (!%p1700_p13), [#allocation3], %s1751_s4 }
  0x40   : > { %s1757_s26 = scalar_lea.vmem (!%p1700_p13), [#allocation2], %s2323_s1 }
  0x43   : > { %1574 = dma.done.wait (%p1685_p7), %s196_s18, 128  }
  0x44   : > { %1576 = vsyncadd (%p1685_p7), %s196_s18, 4294967168 }
  0x45   : > { %1578 = dma.done.wait (%p1679_p3), [#allocation5], 64  }
  0x46   : > { %1580 = vsyncadd (%p1679_p3), [#allocation5], 4294967232 }
  0x47   : > { %1582 = dma.done.wait (%p1679_p3), [#allocation6], 16  }
  0x48   : > { %1584 = vsyncadd (%p1679_p3), [#allocation6], 4294967280 }
  0x49   : > { %212 = sfence }
  0x4a   : > { %s231_s25 = sld [smem:[#allocation7]]  ;;  %v251_v8 = vld [vmem:[%s1757_s26] sm:$0x3]  ;;  %v1201_v13 = vld [vmem:[%s1757_s26 + $0x2] sm:$0x3]  ;;  %p2342_p7 = scmp.ne.s32.totalorder %s2332_s23, 0 }
  0x4b   : > { %s1183_s29 = sld [smem:[#allocation7 + $0x1]]  ;;  %v1202_v19 = vld [vmem:[%s1757_s26 + $0x4] sm:$0x3]  ;;  %v1203_v25 = vld [vmem:[%s1757_s26 + $0x6] sm:$0x3] }
  0x4c   : > { %s1184_s27 = sld [smem:[#allocation7 + $0x2]] }
  0x4d   : > { %s1185_s6 = sld [smem:[#allocation7 + $0x3]] }
  0x4e   : > { %s1186_s7 = sld [smem:[#allocation7 + $0x80]] }
  0x4f   : > { %s1187_s22 = sld [smem:[#allocation7 + $0x81]] }
  0x50   : > { %s1188_s8 = sld [smem:[#allocation7 + $0x82]]  ;;  %v1785_v0 = vstv %s231_s25 }
  0x51   : > { %s1771_s9 = sld [smem:[#allocation7 + $0x83]]  ;;  %v1787_v1 = vstv %s1183_s29  ;;  %v267_v9 = vmul.f32 0.0, %v1785_v0 }
  0x52   : > { %s1190_s28 = sld [smem:[#allocation7 + $0x100]]  ;;  %v1789_v2 = vstv %s1184_s27  ;;  %v270_v10 = vmul.f32 0.0, %v1787_v1  ;;  %s1618_s27 = smov [#allocation9]  }
  0x53   : > { %s1191_s10 = sld [smem:[#allocation7 + $0x101]]  ;;  %v1793_v3 = vstv %s1185_s6  ;;  %v273_v11 = vmul.f32 0.0, %v1789_v2  ;;  %s1527_s6 = sshll.u32 %s1618_s27, 4  ;;  %s1528_s6 = int_to_ptr.vmem [resolvable:$false] %s1527_s6 }
  0x54   : > { %s1773_s19 = sld [smem:[#allocation7 + $0x102]]  ;;  %v1795_v4 = vstv %s1186_s7  ;;  %v276_v14 = vmul.f32 0.0, %v1793_v3  ;;  %s1529_s7 = scalar_lea.vmem %s1528_s6, 256 }
  0x55   : > { %s1775_s11 = sld [smem:[#allocation7 + $0x103]]  ;;  %v1797_v5 = vstv %s1187_s22  ;;  %v280_v15 = vmul.f32 0.0, %v1795_v4 }
  0x56   : > { %s1194_s20 = sld [smem:[#allocation7 + $0x180]]  ;;  %v1801_v6 = vstv %s1188_s8  ;;  %v283_v16 = vmul.f32 0.0, %v1797_v5 }
  0x57   : > { %s1777_s21 = sld [smem:[#allocation7 + $0x181]]  ;;  %v286_v20 = vmul.f32 0.0, %v1801_v6  ;;  %v1820_v21 = vstv %s1771_s9 }
  0x58   : > { %s1779_s18 = sld [smem:[#allocation7 + $0x182]]  ;;  %v1803_v7 = vstv %s1190_s28  ;;  %v289_v45 = vmul.f32 0.0, %v1820_v21 }
  0x59   : > { %s1781_s1 = sld [smem:[#allocation7 + $0x183]]  ;;  %v1809_v12 = vstv %s1191_s10  ;;  %v293_v22 = vmul.f32 0.0, %v1803_v7 }
  0x5a   : > { %s247_s0 = sld [smem:[#allocation8]]  ;;  %v296_v26 = vmul.f32 0.0, %v1809_v12  ;;  %v1835_v30 = vstv %s1773_s19 }
  0x5b   : > { %s1783_s2 = sld [smem:[#allocation8 + $0x1]]  ;;  %v1849_v38 = vstv %s1775_s11  ;;  %v299_v42 = vmul.f32 0.0, %v1835_v30 }
  0x5c   : > { %s1791_s5 = sld [smem:[#allocation8 + $0x2]]  ;;  %v1815_v17 = vstv %s1194_s20  ;;  %v302_v50 = vmul.f32 0.0, %v1849_v38 }
  0x5d   : > { %s1799_s16 = sld [smem:[#allocation8 + $0x3]]  ;;  %v1829_v27 = vstv %s1777_s21  ;;  %v306_v31 = vmul.f32 0.0, %v1815_v17 }
  0x5e   : > { %v1843_v35 = vstv %s1779_s18  ;;  %v309_v39 = vmul.f32 0.0, %v1829_v27 }
  0x5f   : > { %v1855_v43 = vstv %s1781_s1  ;;  %v312_v47 = vmul.f32 0.0, %v1843_v35 }
  0x60   : > { %v252_v18 = vstv %s247_s0  ;;  %v315_v53 = vmul.f32 0.0, %v1855_v43  ;;  %s1213_s0 = sshll.u32 %s1603_s15, 7  ;;  %s1046_s15 = scalar_lea.sflag [#allocation4], %s1751_s4 }
  0x61   : > { %v1823_v23 = vadd.f32 %v252_v18, %v251_v8  ;;  %v256_v24 = vstv %s1783_s2  ;;  %s2341_s2 = sshll.u32 %s1751_s4, 3  ;;  %s2268_s25 = scalar_lea.hbm %s2321_s3, %s1213_s0 }
  0x62   : > { %v1831_v28 = vadd.f32 %v1201_v13, %v256_v24  ;;  %v260_v29 = vstv %s1791_s5 }
  0x63   : > { %v1838_v32 = vadd.f32 %v1202_v19, %v260_v29  ;;  %v264_v33 = vstv %s1799_s16  ;;  %v268_v34 = vadd.f32 %v267_v9, %v1823_v23  ;;  %s230_s16 = scalar_lea.vmem [#allocation9], %s2341_s2 }
  0x64   : > { %v1845_v36 = vadd.f32 %v1203_v25, %v264_v33  ;;  %v281_v37 = vadd.f32 %v280_v15, %v1831_v28  ;;  %s1060_s5 = sshll.u32 %s230_s16, 4  ;;  %s2270_s5 = int_to_ptr.vmem [resolvable:$true] %s1060_s5 }
  0x65   : > { %v271_v40 = vadd.f32 %v270_v10, %v268_v34  ;;  %v294_v41 = vadd.f32 %v293_v22, %v1838_v32  ;;  %s1523_s29 = scalar_lea.vmem %s2270_s5, 128  ;;  %p1530_p0 = scmp.lt.s32.totalorder %s2270_s5, %s1528_s6 }
  0x66   : > { %v284_v44 = vadd.f32 %v283_v16, %v281_v37  ;;  %v307_v46 = vadd.f32 %v306_v31, %v1845_v36  ;;  %p1524_p3 = scmp.ne.s32.totalorder %s2270_s5, %s1523_s29  ;;  %p1531_p9 = scmp.lt.s32.totalorder %s1529_s7, %s1523_s29 }
  0x67   : > { %v274_v48 = vadd.f32 %v273_v11, %v271_v40  ;;  %v297_v49 = vadd.f32 %v296_v26, %v294_v41 }
  0x68   : > { %v287_v51 = vadd.f32 %v286_v20, %v284_v44  ;;  %v310_v52 = vadd.f32 %v309_v39, %v307_v46  ;;  %p1525_p13 = pnand %p1524_p3, %p2342_p7  ;;  %p1532_p12 = por %p1531_p9, %p1530_p0 }
  0x69   : > { %v277_v54 = vadd.f32 %v276_v14, %v274_v48  ;;  %v300_v55 = vadd.f32 %v299_v42, %v297_v49 }
  0x6a   : > { %v290_v56 = vadd.f32 %v289_v45, %v287_v51  ;;  %v313_v57 = vadd.f32 %v312_v47, %v310_v52  ;;  %p1526_p4 = pneg %p1525_p13 }
  0x6b   : > { %1301 = vtanh.f32 %v277_v54  ;;  %v303_v58 = vadd.f32 %v302_v50, %v300_v55 }
  0x6c   : > { %1303 = vtanh.f32 %v290_v56  ;;  %v316_v59 = vadd.f32 %v315_v53, %v313_v57  ;;  %p1533_p2 = pnand %p1532_p12, %p1526_p4 }
  0x6d   : > { %1305 = vtanh.f32 %v303_v58 }
  0x6e   : > { %1307 = vtanh.f32 %v316_v59 }
  0x78   : > { %v1302_v60 = vpop.eup %1301 }
  0x79   : > { %v1304_v61 = vpop.eup %1303  ;;  %v318_v62 = vmul.f32 %v1302_v60, %v1785_v0  ;;  %v327_v63 = vmul.f32 %v1302_v60, %v1795_v4  ;;  %v336_v8 = vmul.f32 %v1302_v60, %v1803_v7  ;;  %v345_v9 = vmul.f32 %v1302_v60, %v1815_v17 }
  0x7a   : > { %v1306_v10 = vpop.eup %1305  ;;  %v320_v11 = vmul.f32 %v1304_v61, %v1787_v1  ;;  %v329_v13 = vmul.f32 %v1304_v61, %v1797_v5  ;;  %v338_v14 = vmul.f32 %v1304_v61, %v1809_v12  ;;  %v347_v15 = vmul.f32 %v1304_v61, %v1829_v27 }
  0x7b   : > { %v1308_v16 = vpop.eup %1307  ;;  %v319_v18 = vadd.f32 %v318_v62, %v1823_v23  ;;  %v322_v19 = vmul.f32 %v1306_v10, %v1789_v2  ;;  %v328_v20 = vadd.f32 %v327_v63, %v1831_v28  ;;  %v331_v22 = vmul.f32 %v1306_v10, %v1801_v6 }
  0x7c   : > { %v324_v24 = vmul.f32 %v1308_v16, %v1793_v3  ;;  %v337_v25 = vadd.f32 %v336_v8, %v1838_v32  ;;  %v340_v26 = vmul.f32 %v1306_v10, %v1835_v30  ;;  %v333_v33 = vmul.f32 %v1308_v16, %v1820_v21 }
  0x7d   : > { %v321_v29 = vadd.f32 %v320_v11, %v319_v18  ;;  %v330_v31 = vadd.f32 %v329_v13, %v328_v20  ;;  %v346_v34 = vadd.f32 %v345_v9, %v1845_v36  ;;  %v342_v39 = vmul.f32 %v1308_v16, %v1849_v38 }
  0x7e   : > { %v339_v37 = vadd.f32 %v338_v14, %v337_v25  ;;  %v349_v40 = vmul.f32 %v1306_v10, %v1843_v35  ;;  %v351_v45 = vmul.f32 %v1308_v16, %v1855_v43 }
  0x7f   : > { %v323_v41 = vadd.f32 %v322_v19, %v321_v29  ;;  %v332_v42 = vadd.f32 %v331_v22, %v330_v31  ;;  %v348_v44 = vadd.f32 %v347_v15, %v346_v34 }
  0x80   : > { %v341_v46 = vadd.f32 %v340_v26, %v339_v37 }
  0x81   : > { %v325_v47 = vadd.f32 %v324_v24, %v323_v41  ;;  %v334_v48 = vadd.f32 %v333_v33, %v332_v42  ;;  %v350_v49 = vadd.f32 %v349_v40, %v348_v44 }
  0x82   : > { %v343_v50 = vadd.f32 %v342_v39, %v341_v46 }
  0x83   : > { %1309 = vtanh.f32 %v325_v47  ;;  %v352_v51 = vadd.f32 %v351_v45, %v350_v49 }
  0x84   : > { %1311 = vtanh.f32 %v334_v48 }
  0x85   : > { %1313 = vtanh.f32 %v343_v50 }
  0x86   : > { %1315 = vtanh.f32 %v352_v51 }
  0x90   : > { %v1310_v52 = vpop.eup %1309 }
  0x91   : > { %v1312_v53 = vpop.eup %1311  ;;  %v354_v54 = vmul.f32 %v1310_v52, %v1785_v0  ;;  %v363_v55 = vmul.f32 %v1310_v52, %v1795_v4  ;;  %v372_v56 = vmul.f32 %v1310_v52, %v1803_v7  ;;  %v381_v57 = vmul.f32 %v1310_v52, %v1815_v17 }
  0x92   : > { %v1314_v58 = vpop.eup %1313  ;;  %v356_v59 = vmul.f32 %v1312_v53, %v1787_v1  ;;  %v365_v60 = vmul.f32 %v1312_v53, %v1797_v5  ;;  %v374_v61 = vmul.f32 %v1312_v53, %v1809_v12  ;;  %v383_v62 = vmul.f32 %v1312_v53, %v1829_v27 }
  0x93   : > { %v1316_v63 = vpop.eup %1315  ;;  %v355_v8 = vadd.f32 %v354_v54, %v1823_v23  ;;  %v358_v9 = vmul.f32 %v1314_v58, %v1789_v2  ;;  %v364_v10 = vadd.f32 %v363_v55, %v1831_v28  ;;  %v367_v11 = vmul.f32 %v1314_v58, %v1801_v6 }
  0x94   : > { %v360_v13 = vmul.f32 %v1316_v63, %v1793_v3  ;;  %v373_v14 = vadd.f32 %v372_v56, %v1838_v32  ;;  %v376_v15 = vmul.f32 %v1314_v58, %v1835_v30  ;;  %v369_v19 = vmul.f32 %v1316_v63, %v1820_v21 }
  0x95   : > { %v357_v16 = vadd.f32 %v356_v59, %v355_v8  ;;  %v366_v18 = vadd.f32 %v365_v60, %v364_v10  ;;  %v382_v20 = vadd.f32 %v381_v57, %v1845_v36  ;;  %v378_v24 = vmul.f32 %v1316_v63, %v1849_v38 }
  0x96   : > { %v375_v22 = vadd.f32 %v374_v61, %v373_v14  ;;  %v385_v25 = vmul.f32 %v1314_v58, %v1843_v35  ;;  %v387_v33 = vmul.f32 %v1316_v63, %v1855_v43 }
  0x97   : > { %v359_v26 = vadd.f32 %v358_v9, %v357_v16  ;;  %v368_v29 = vadd.f32 %v367_v11, %v366_v18  ;;  %v384_v31 = vadd.f32 %v383_v62, %v382_v20 }
  0x98   : > { %v377_v34 = vadd.f32 %v376_v15, %v375_v22 }
  0x99   : > { %v361_v37 = vadd.f32 %v360_v13, %v359_v26  ;;  %v370_v39 = vadd.f32 %v369_v19, %v368_v29  ;;  %v386_v40 = vadd.f32 %v385_v25, %v384_v31 }
  0x9a   : > { %v379_v41 = vadd.f32 %v378_v24, %v377_v34 }
  0x9b   : > { %1317 = vtanh.f32 %v361_v37  ;;  %v388_v42 = vadd.f32 %v387_v33, %v386_v40 }
  0x9c   : > { %1319 = vtanh.f32 %v370_v39 }
  0x9d   : > { %1321 = vtanh.f32 %v379_v41 }
  0x9e   : > { %1323 = vtanh.f32 %v388_v42 }
  0xa8   : > { %v1318_v44 = vpop.eup %1317 }
  0xa9   : > { %v1320_v45 = vpop.eup %1319  ;;  %v390_v46 = vmul.f32 %v1318_v44, %v1785_v0  ;;  %v399_v47 = vmul.f32 %v1318_v44, %v1795_v4  ;;  %v408_v48 = vmul.f32 %v1318_v44, %v1803_v7  ;;  %v417_v49 = vmul.f32 %v1318_v44, %v1815_v17 }
  0xaa   : > { %v1322_v50 = vpop.eup %1321  ;;  %v392_v51 = vmul.f32 %v1320_v45, %v1787_v1  ;;  %v401_v52 = vmul.f32 %v1320_v45, %v1797_v5  ;;  %v410_v53 = vmul.f32 %v1320_v45, %v1809_v12  ;;  %v419_v54 = vmul.f32 %v1320_v45, %v1829_v27 }
  0xab   : > { %v1324_v55 = vpop.eup %1323  ;;  %v391_v56 = vadd.f32 %v390_v46, %v1823_v23  ;;  %v394_v57 = vmul.f32 %v1322_v50, %v1789_v2  ;;  %v400_v58 = vadd.f32 %v399_v47, %v1831_v28  ;;  %v403_v59 = vmul.f32 %v1322_v50, %v1801_v6 }
  0xac   : > { %v396_v60 = vmul.f32 %v1324_v55, %v1793_v3  ;;  %v409_v61 = vadd.f32 %v408_v48, %v1838_v32  ;;  %v412_v62 = vmul.f32 %v1322_v50, %v1835_v30  ;;  %v405_v9 = vmul.f32 %v1324_v55, %v1820_v21 }
  0xad   : > { %v393_v63 = vadd.f32 %v392_v51, %v391_v56  ;;  %v402_v8 = vadd.f32 %v401_v52, %v400_v58  ;;  %v418_v10 = vadd.f32 %v417_v49, %v1845_v36  ;;  %v414_v13 = vmul.f32 %v1324_v55, %v1849_v38 }
  0xae   : > { %v411_v11 = vadd.f32 %v410_v53, %v409_v61  ;;  %v421_v14 = vmul.f32 %v1322_v50, %v1843_v35  ;;  %v423_v19 = vmul.f32 %v1324_v55, %v1855_v43 }
  0xaf   : > { %v395_v15 = vadd.f32 %v394_v57, %v393_v63  ;;  %v404_v16 = vadd.f32 %v403_v59, %v402_v8  ;;  %v420_v18 = vadd.f32 %v419_v54, %v418_v10 }
  0xb0   : > { %v413_v20 = vadd.f32 %v412_v62, %v411_v11 }
  0xb1   : > { %v397_v22 = vadd.f32 %v396_v60, %v395_v15  ;;  %v406_v24 = vadd.f32 %v405_v9, %v404_v16  ;;  %v422_v25 = vadd.f32 %v421_v14, %v420_v18 }
  0xb2   : > { %v415_v26 = vadd.f32 %v414_v13, %v413_v20 }
  0xb3   : > { %1325 = vtanh.f32 %v397_v22  ;;  %v424_v29 = vadd.f32 %v423_v19, %v422_v25 }
  0xb4   : > { %1327 = vtanh.f32 %v406_v24 }
  0xb5   : > { %1329 = vtanh.f32 %v415_v26 }
  0xb6   : > { %1331 = vtanh.f32 %v424_v29 }
  0xc0   : > { %v1326_v31 = vpop.eup %1325 }
  0xc1   : > { %v1328_v33 = vpop.eup %1327  ;;  %v426_v34 = vmul.f32 %v1326_v31, %v1785_v0  ;;  %v435_v37 = vmul.f32 %v1326_v31, %v1795_v4  ;;  %v444_v39 = vmul.f32 %v1326_v31, %v1803_v7  ;;  %v453_v40 = vmul.f32 %v1326_v31, %v1815_v17 }
  0xc2   : > { %v1330_v41 = vpop.eup %1329  ;;  %v428_v42 = vmul.f32 %v1328_v33, %v1787_v1  ;;  %v437_v44 = vmul.f32 %v1328_v33, %v1797_v5  ;;  %v446_v45 = vmul.f32 %v1328_v33, %v1809_v12  ;;  %v455_v46 = vmul.f32 %v1328_v33, %v1829_v27 }
  0xc3   : > { %v1332_v47 = vpop.eup %1331  ;;  %v427_v48 = vadd.f32 %v426_v34, %v1823_v23  ;;  %v430_v49 = vmul.f32 %v1330_v41, %v1789_v2  ;;  %v436_v50 = vadd.f32 %v435_v37, %v1831_v28  ;;  %v439_v51 = vmul.f32 %v1330_v41, %v1801_v6 }
  0xc4   : > { %v432_v52 = vmul.f32 %v1332_v47, %v1793_v3  ;;  %v445_v53 = vadd.f32 %v444_v39, %v1838_v32  ;;  %v448_v54 = vmul.f32 %v1330_v41, %v1835_v30  ;;  %v441_v57 = vmul.f32 %v1332_v47, %v1820_v21 }
  0xc5   : > { %v429_v55 = vadd.f32 %v428_v42, %v427_v48  ;;  %v438_v56 = vadd.f32 %v437_v44, %v436_v50  ;;  %v454_v58 = vadd.f32 %v453_v40, %v1845_v36  ;;  %v450_v60 = vmul.f32 %v1332_v47, %v1849_v38 }
  0xc6   : > { %v447_v59 = vadd.f32 %v446_v45, %v445_v53  ;;  %v457_v61 = vmul.f32 %v1330_v41, %v1843_v35  ;;  %v459_v9 = vmul.f32 %v1332_v47, %v1855_v43 }
  0xc7   : > { %v431_v62 = vadd.f32 %v430_v49, %v429_v55  ;;  %v440_v63 = vadd.f32 %v439_v51, %v438_v56  ;;  %v456_v8 = vadd.f32 %v455_v46, %v454_v58 }
  0xc8   : > { %v449_v10 = vadd.f32 %v448_v54, %v447_v59 }
  0xc9   : > { %v433_v11 = vadd.f32 %v432_v52, %v431_v62  ;;  %v442_v13 = vadd.f32 %v441_v57, %v440_v63  ;;  %v458_v14 = vadd.f32 %v457_v61, %v456_v8 }
  0xca   : > { %v451_v15 = vadd.f32 %v450_v60, %v449_v10 }
  0xcb   : > { %1333 = vtanh.f32 %v433_v11  ;;  %v460_v16 = vadd.f32 %v459_v9, %v458_v14 }
  0xcc   : > { %1335 = vtanh.f32 %v442_v13 }
  0xcd   : > { %1337 = vtanh.f32 %v451_v15 }
  0xce   : > { %1339 = vtanh.f32 %v460_v16 }
  0xd8   : > { %v1334_v18 = vpop.eup %1333 }
  0xd9   : > { %v1336_v19 = vpop.eup %1335  ;;  %v462_v20 = vmul.f32 %v1334_v18, %v1785_v0  ;;  %v471_v22 = vmul.f32 %v1334_v18, %v1795_v4  ;;  %v480_v24 = vmul.f32 %v1334_v18, %v1803_v7  ;;  %v489_v25 = vmul.f32 %v1334_v18, %v1815_v17 }
  0xda   : > { %v1338_v26 = vpop.eup %1337  ;;  %v464_v29 = vmul.f32 %v1336_v19, %v1787_v1  ;;  %v473_v31 = vmul.f32 %v1336_v19, %v1797_v5  ;;  %v482_v33 = vmul.f32 %v1336_v19, %v1809_v12  ;;  %v491_v34 = vmul.f32 %v1336_v19, %v1829_v27 }
  0xdb   : > { %v1340_v37 = vpop.eup %1339  ;;  %v463_v39 = vadd.f32 %v462_v20, %v1823_v23  ;;  %v466_v40 = vmul.f32 %v1338_v26, %v1789_v2  ;;  %v472_v41 = vadd.f32 %v471_v22, %v1831_v28  ;;  %v475_v42 = vmul.f32 %v1338_v26, %v1801_v6 }
  0xdc   : > { %v468_v44 = vmul.f32 %v1340_v37, %v1793_v3  ;;  %v481_v45 = vadd.f32 %v480_v24, %v1838_v32  ;;  %v484_v46 = vmul.f32 %v1338_v26, %v1835_v30  ;;  %v477_v49 = vmul.f32 %v1340_v37, %v1820_v21 }
  0xdd   : > { %v465_v47 = vadd.f32 %v464_v29, %v463_v39  ;;  %v474_v48 = vadd.f32 %v473_v31, %v472_v41  ;;  %v490_v50 = vadd.f32 %v489_v25, %v1845_v36  ;;  %v486_v52 = vmul.f32 %v1340_v37, %v1849_v38 }
  0xde   : > { %v483_v51 = vadd.f32 %v482_v33, %v481_v45  ;;  %v493_v53 = vmul.f32 %v1338_v26, %v1843_v35  ;;  %v495_v57 = vmul.f32 %v1340_v37, %v1855_v43 }
  0xdf   : > { %v467_v54 = vadd.f32 %v466_v40, %v465_v47  ;;  %v476_v55 = vadd.f32 %v475_v42, %v474_v48  ;;  %v492_v56 = vadd.f32 %v491_v34, %v490_v50 }
  0xe0   : > { %v485_v58 = vadd.f32 %v484_v46, %v483_v51 }
  0xe1   : > { %v469_v59 = vadd.f32 %v468_v44, %v467_v54  ;;  %v478_v60 = vadd.f32 %v477_v49, %v476_v55  ;;  %v494_v61 = vadd.f32 %v493_v53, %v492_v56 }
  0xe2   : > { %v487_v62 = vadd.f32 %v486_v52, %v485_v58 }
  0xe3   : > { %1341 = vtanh.f32 %v469_v59  ;;  %v496_v63 = vadd.f32 %v495_v57, %v494_v61 }
  0xe4   : > { %1343 = vtanh.f32 %v478_v60 }
  0xe5   : > { %1345 = vtanh.f32 %v487_v62 }
  0xe6   : > { %1347 = vtanh.f32 %v496_v63 }
  0xf0   : > { %v1342_v8 = vpop.eup %1341 }
  0xf1   : > { %v1344_v9 = vpop.eup %1343  ;;  %v498_v10 = vmul.f32 %v1342_v8, %v1785_v0  ;;  %v507_v11 = vmul.f32 %v1342_v8, %v1795_v4  ;;  %v516_v13 = vmul.f32 %v1342_v8, %v1803_v7  ;;  %v525_v14 = vmul.f32 %v1342_v8, %v1815_v17 }
  0xf2   : > { %v1346_v15 = vpop.eup %1345  ;;  %v500_v16 = vmul.f32 %v1344_v9, %v1787_v1  ;;  %v509_v18 = vmul.f32 %v1344_v9, %v1797_v5  ;;  %v518_v19 = vmul.f32 %v1344_v9, %v1809_v12  ;;  %v527_v20 = vmul.f32 %v1344_v9, %v1829_v27 }
  0xf3   : > { %v1348_v22 = vpop.eup %1347  ;;  %v499_v24 = vadd.f32 %v498_v10, %v1823_v23  ;;  %v502_v25 = vmul.f32 %v1346_v15, %v1789_v2  ;;  %v508_v26 = vadd.f32 %v507_v11, %v1831_v28  ;;  %v511_v29 = vmul.f32 %v1346_v15, %v1801_v6 }
  0xf4   : > { %v504_v31 = vmul.f32 %v1348_v22, %v1793_v3  ;;  %v517_v33 = vadd.f32 %v516_v13, %v1838_v32  ;;  %v520_v34 = vmul.f32 %v1346_v15, %v1835_v30  ;;  %v513_v40 = vmul.f32 %v1348_v22, %v1820_v21 }
  0xf5   : > { %v501_v37 = vadd.f32 %v500_v16, %v499_v24  ;;  %v510_v39 = vadd.f32 %v509_v18, %v508_v26  ;;  %v526_v41 = vadd.f32 %v525_v14, %v1845_v36  ;;  %v522_v44 = vmul.f32 %v1348_v22, %v1849_v38 }
  0xf6   : > { %v519_v42 = vadd.f32 %v518_v19, %v517_v33  ;;  %v529_v45 = vmul.f32 %v1346_v15, %v1843_v35  ;;  %v531_v49 = vmul.f32 %v1348_v22, %v1855_v43 }
  0xf7   : > { %v503_v46 = vadd.f32 %v502_v25, %v501_v37  ;;  %v512_v47 = vadd.f32 %v511_v29, %v510_v39  ;;  %v528_v48 = vadd.f32 %v527_v20, %v526_v41 }
  0xf8   : > { %v521_v50 = vadd.f32 %v520_v34, %v519_v42 }
  0xf9   : > { %v505_v51 = vadd.f32 %v504_v31, %v503_v46  ;;  %v514_v52 = vadd.f32 %v513_v40, %v512_v47  ;;  %v530_v53 = vadd.f32 %v529_v45, %v528_v48 }
  0xfa   : > { %v523_v54 = vadd.f32 %v522_v44, %v521_v50 }
  0xfb   : > { %1349 = vtanh.f32 %v505_v51  ;;  %v532_v55 = vadd.f32 %v531_v49, %v530_v53 }
  0xfc   : > { %1351 = vtanh.f32 %v514_v52 }
  0xfd   : > { %1353 = vtanh.f32 %v523_v54 }
  0xfe   : > { %1355 = vtanh.f32 %v532_v55 }
 0x108   : > { %v1350_v56 = vpop.eup %1349 }
 0x109   : > { %v1352_v57 = vpop.eup %1351  ;;  %v534_v58 = vmul.f32 %v1350_v56, %v1785_v0  ;;  %v543_v59 = vmul.f32 %v1350_v56, %v1795_v4  ;;  %v552_v60 = vmul.f32 %v1350_v56, %v1803_v7  ;;  %v561_v61 = vmul.f32 %v1350_v56, %v1815_v17 }
 0x10a   : > { %v1354_v62 = vpop.eup %1353  ;;  %v536_v63 = vmul.f32 %v1352_v57, %v1787_v1  ;;  %v545_v8 = vmul.f32 %v1352_v57, %v1797_v5  ;;  %v554_v9 = vmul.f32 %v1352_v57, %v1809_v12  ;;  %v563_v10 = vmul.f32 %v1352_v57, %v1829_v27 }
 0x10b   : > { %v1356_v11 = vpop.eup %1355  ;;  %v535_v13 = vadd.f32 %v534_v58, %v1823_v23  ;;  %v538_v14 = vmul.f32 %v1354_v62, %v1789_v2  ;;  %v544_v15 = vadd.f32 %v543_v59, %v1831_v28  ;;  %v547_v16 = vmul.f32 %v1354_v62, %v1801_v6 }
 0x10c   : > { %v540_v18 = vmul.f32 %v1356_v11, %v1793_v3  ;;  %v553_v19 = vadd.f32 %v552_v60, %v1838_v32  ;;  %v556_v20 = vmul.f32 %v1354_v62, %v1835_v30  ;;  %v549_v25 = vmul.f32 %v1356_v11, %v1820_v21 }
 0x10d   : > { %v537_v22 = vadd.f32 %v536_v63, %v535_v13  ;;  %v546_v24 = vadd.f32 %v545_v8, %v544_v15  ;;  %v562_v26 = vadd.f32 %v561_v61, %v1845_v36  ;;  %v558_v31 = vmul.f32 %v1356_v11, %v1849_v38 }
 0x10e   : > { %v555_v29 = vadd.f32 %v554_v9, %v553_v19  ;;  %v565_v33 = vmul.f32 %v1354_v62, %v1843_v35  ;;  %v567_v40 = vmul.f32 %v1356_v11, %v1855_v43 }
 0x10f   : > { %v539_v34 = vadd.f32 %v538_v14, %v537_v22  ;;  %v548_v37 = vadd.f32 %v547_v16, %v546_v24  ;;  %v564_v39 = vadd.f32 %v563_v10, %v562_v26 }
 0x110   : > { %v557_v41 = vadd.f32 %v556_v20, %v555_v29 }
 0x111   : > { %v541_v42 = vadd.f32 %v540_v18, %v539_v34  ;;  %v550_v44 = vadd.f32 %v549_v25, %v548_v37  ;;  %v566_v45 = vadd.f32 %v565_v33, %v564_v39 }
 0x112   : > { %v559_v46 = vadd.f32 %v558_v31, %v557_v41 }
 0x113   : > { %1357 = vtanh.f32 %v541_v42  ;;  %v568_v47 = vadd.f32 %v567_v40, %v566_v45 }
 0x114   : > { %1359 = vtanh.f32 %v550_v44 }
 0x115   : > { %1361 = vtanh.f32 %v559_v46 }
 0x116   : > { %1363 = vtanh.f32 %v568_v47 }
 0x120   : > { %v1358_v48 = vpop.eup %1357 }
 0x121   : > { %v1360_v49 = vpop.eup %1359  ;;  %v570_v50 = vmul.f32 %v1358_v48, %v1785_v0  ;;  %v579_v51 = vmul.f32 %v1358_v48, %v1795_v4  ;;  %v588_v52 = vmul.f32 %v1358_v48, %v1803_v7  ;;  %v597_v53 = vmul.f32 %v1358_v48, %v1815_v17 }
 0x122   : > { %v1362_v54 = vpop.eup %1361  ;;  %v572_v55 = vmul.f32 %v1360_v49, %v1787_v1  ;;  %v581_v56 = vmul.f32 %v1360_v49, %v1797_v5  ;;  %v590_v57 = vmul.f32 %v1360_v49, %v1809_v12  ;;  %v599_v58 = vmul.f32 %v1360_v49, %v1829_v27 }
 0x123   : > { %v1364_v59 = vpop.eup %1363  ;;  %v571_v60 = vadd.f32 %v570_v50, %v1823_v23  ;;  %v574_v61 = vmul.f32 %v1362_v54, %v1789_v2  ;;  %v580_v62 = vadd.f32 %v579_v51, %v1831_v28  ;;  %v583_v63 = vmul.f32 %v1362_v54, %v1801_v6 }
 0x124   : > { %v576_v8 = vmul.f32 %v1364_v59, %v1793_v3  ;;  %v589_v9 = vadd.f32 %v588_v52, %v1838_v32  ;;  %v592_v10 = vmul.f32 %v1362_v54, %v1835_v30  ;;  %v585_v14 = vmul.f32 %v1364_v59, %v1820_v21 }
 0x125   : > { %v573_v11 = vadd.f32 %v572_v55, %v571_v60  ;;  %v582_v13 = vadd.f32 %v581_v56, %v580_v62  ;;  %v598_v15 = vadd.f32 %v597_v53, %v1845_v36  ;;  %v594_v18 = vmul.f32 %v1364_v59, %v1849_v38 }
 0x126   : > { %v591_v16 = vadd.f32 %v590_v57, %v589_v9  ;;  %v601_v19 = vmul.f32 %v1362_v54, %v1843_v35  ;;  %v603_v25 = vmul.f32 %v1364_v59, %v1855_v43 }
 0x127   : > { %v575_v20 = vadd.f32 %v574_v61, %v573_v11  ;;  %v584_v22 = vadd.f32 %v583_v63, %v582_v13  ;;  %v600_v24 = vadd.f32 %v599_v58, %v598_v15 }
 0x128   : > { %v593_v26 = vadd.f32 %v592_v10, %v591_v16 }
 0x129   : > { %v577_v29 = vadd.f32 %v576_v8, %v575_v20  ;;  %v586_v31 = vadd.f32 %v585_v14, %v584_v22  ;;  %v602_v33 = vadd.f32 %v601_v19, %v600_v24 }
 0x12a   : > { %v595_v34 = vadd.f32 %v594_v18, %v593_v26 }
 0x12b   : > { %1365 = vtanh.f32 %v577_v29  ;;  %v604_v37 = vadd.f32 %v603_v25, %v602_v33 }
 0x12c   : > { %1367 = vtanh.f32 %v586_v31 }
 0x12d   : > { %1369 = vtanh.f32 %v595_v34 }
 0x12e   : > { %1371 = vtanh.f32 %v604_v37 }
 0x138   : > { %v1366_v39 = vpop.eup %1365 }
 0x139   : > { %v1368_v40 = vpop.eup %1367  ;;  %v606_v41 = vmul.f32 %v1366_v39, %v1785_v0  ;;  %v615_v42 = vmul.f32 %v1366_v39, %v1795_v4  ;;  %v624_v44 = vmul.f32 %v1366_v39, %v1803_v7  ;;  %v633_v45 = vmul.f32 %v1366_v39, %v1815_v17 }
 0x13a   : > { %v1370_v46 = vpop.eup %1369  ;;  %v608_v47 = vmul.f32 %v1368_v40, %v1787_v1  ;;  %v617_v48 = vmul.f32 %v1368_v40, %v1797_v5  ;;  %v626_v49 = vmul.f32 %v1368_v40, %v1809_v12  ;;  %v635_v50 = vmul.f32 %v1368_v40, %v1829_v27 }
 0x13b   : > { %v1372_v51 = vpop.eup %1371  ;;  %v607_v52 = vadd.f32 %v606_v41, %v1823_v23  ;;  %v610_v53 = vmul.f32 %v1370_v46, %v1789_v2  ;;  %v616_v54 = vadd.f32 %v615_v42, %v1831_v28  ;;  %v619_v55 = vmul.f32 %v1370_v46, %v1801_v6 }
 0x13c   : > { %v612_v56 = vmul.f32 %v1372_v51, %v1793_v3  ;;  %v625_v57 = vadd.f32 %v624_v44, %v1838_v32  ;;  %v628_v58 = vmul.f32 %v1370_v46, %v1835_v30  ;;  %v621_v61 = vmul.f32 %v1372_v51, %v1820_v21 }
 0x13d   : > { %v609_v59 = vadd.f32 %v608_v47, %v607_v52  ;;  %v618_v60 = vadd.f32 %v617_v48, %v616_v54  ;;  %v634_v62 = vadd.f32 %v633_v45, %v1845_v36  ;;  %v630_v8 = vmul.f32 %v1372_v51, %v1849_v38 }
 0x13e   : > { %v627_v63 = vadd.f32 %v626_v49, %v625_v57  ;;  %v637_v9 = vmul.f32 %v1370_v46, %v1843_v35  ;;  %v639_v14 = vmul.f32 %v1372_v51, %v1855_v43 }
 0x13f   : > { %v611_v10 = vadd.f32 %v610_v53, %v609_v59  ;;  %v620_v11 = vadd.f32 %v619_v55, %v618_v60  ;;  %v636_v13 = vadd.f32 %v635_v50, %v634_v62 }
 0x140   : > { %v629_v15 = vadd.f32 %v628_v58, %v627_v63 }
 0x141   : > { %v613_v16 = vadd.f32 %v612_v56, %v611_v10  ;;  %v622_v18 = vadd.f32 %v621_v61, %v620_v11  ;;  %v638_v19 = vadd.f32 %v637_v9, %v636_v13 }
 0x142   : > { %v631_v20 = vadd.f32 %v630_v8, %v629_v15 }
 0x143   : > { %1373 = vtanh.f32 %v613_v16  ;;  %v640_v22 = vadd.f32 %v639_v14, %v638_v19 }
 0x144   : > { %1375 = vtanh.f32 %v622_v18 }
 0x145   : > { %1377 = vtanh.f32 %v631_v20 }
 0x146   : > { %1379 = vtanh.f32 %v640_v22 }
 0x150   : > { %v1374_v24 = vpop.eup %1373 }
 0x151   : > { %v1376_v25 = vpop.eup %1375  ;;  %v642_v26 = vmul.f32 %v1374_v24, %v1785_v0  ;;  %v651_v29 = vmul.f32 %v1374_v24, %v1795_v4  ;;  %v660_v31 = vmul.f32 %v1374_v24, %v1803_v7  ;;  %v669_v33 = vmul.f32 %v1374_v24, %v1815_v17 }
 0x152   : > { %v1378_v34 = vpop.eup %1377  ;;  %v644_v37 = vmul.f32 %v1376_v25, %v1787_v1  ;;  %v653_v39 = vmul.f32 %v1376_v25, %v1797_v5  ;;  %v662_v40 = vmul.f32 %v1376_v25, %v1809_v12  ;;  %v671_v41 = vmul.f32 %v1376_v25, %v1829_v27 }
 0x153   : > { %v1380_v42 = vpop.eup %1379  ;;  %v643_v44 = vadd.f32 %v642_v26, %v1823_v23  ;;  %v646_v45 = vmul.f32 %v1378_v34, %v1789_v2  ;;  %v652_v46 = vadd.f32 %v651_v29, %v1831_v28  ;;  %v655_v47 = vmul.f32 %v1378_v34, %v1801_v6 }
 0x154   : > { %v648_v48 = vmul.f32 %v1380_v42, %v1793_v3  ;;  %v661_v49 = vadd.f32 %v660_v31, %v1838_v32  ;;  %v664_v50 = vmul.f32 %v1378_v34, %v1835_v30  ;;  %v657_v53 = vmul.f32 %v1380_v42, %v1820_v21 }
 0x155   : > { %v645_v51 = vadd.f32 %v644_v37, %v643_v44  ;;  %v654_v52 = vadd.f32 %v653_v39, %v652_v46  ;;  %v670_v54 = vadd.f32 %v669_v33, %v1845_v36  ;;  %v666_v56 = vmul.f32 %v1380_v42, %v1849_v38 }
 0x156   : > { %v663_v55 = vadd.f32 %v662_v40, %v661_v49  ;;  %v673_v57 = vmul.f32 %v1378_v34, %v1843_v35  ;;  %v675_v61 = vmul.f32 %v1380_v42, %v1855_v43 }
 0x157   : > { %v647_v58 = vadd.f32 %v646_v45, %v645_v51  ;;  %v656_v59 = vadd.f32 %v655_v47, %v654_v52  ;;  %v672_v60 = vadd.f32 %v671_v41, %v670_v54 }
 0x158   : > { %v665_v62 = vadd.f32 %v664_v50, %v663_v55 }
 0x159   : > { %v649_v63 = vadd.f32 %v648_v48, %v647_v58  ;;  %v658_v8 = vadd.f32 %v657_v53, %v656_v59  ;;  %v674_v9 = vadd.f32 %v673_v57, %v672_v60 }
 0x15a   : > { %v667_v10 = vadd.f32 %v666_v56, %v665_v62 }
 0x15b   : > { %1381 = vtanh.f32 %v649_v63  ;;  %v676_v11 = vadd.f32 %v675_v61, %v674_v9 }
 0x15c   : > { %1383 = vtanh.f32 %v658_v8 }
 0x15d   : > { %1385 = vtanh.f32 %v667_v10 }
 0x15e   : > { %1387 = vtanh.f32 %v676_v11 }
 0x168   : > { %v1382_v13 = vpop.eup %1381 }
 0x169   : > { %v1384_v14 = vpop.eup %1383  ;;  %v678_v15 = vmul.f32 %v1382_v13, %v1785_v0  ;;  %v687_v16 = vmul.f32 %v1382_v13, %v1795_v4  ;;  %v696_v18 = vmul.f32 %v1382_v13, %v1803_v7  ;;  %v705_v19 = vmul.f32 %v1382_v13, %v1815_v17 }
 0x16a   : > { %v1386_v20 = vpop.eup %1385  ;;  %v680_v22 = vmul.f32 %v1384_v14, %v1787_v1  ;;  %v689_v24 = vmul.f32 %v1384_v14, %v1797_v5  ;;  %v698_v25 = vmul.f32 %v1384_v14, %v1809_v12  ;;  %v707_v26 = vmul.f32 %v1384_v14, %v1829_v27 }
 0x16b   : > { %v1388_v29 = vpop.eup %1387  ;;  %v679_v31 = vadd.f32 %v678_v15, %v1823_v23  ;;  %v682_v33 = vmul.f32 %v1386_v20, %v1789_v2  ;;  %v688_v34 = vadd.f32 %v687_v16, %v1831_v28  ;;  %v691_v37 = vmul.f32 %v1386_v20, %v1801_v6 }
 0x16c   : > { %v684_v39 = vmul.f32 %v1388_v29, %v1793_v3  ;;  %v697_v40 = vadd.f32 %v696_v18, %v1838_v32  ;;  %v700_v41 = vmul.f32 %v1386_v20, %v1835_v30  ;;  %v693_v45 = vmul.f32 %v1388_v29, %v1820_v21 }
 0x16d   : > { %v681_v42 = vadd.f32 %v680_v22, %v679_v31  ;;  %v690_v44 = vadd.f32 %v689_v24, %v688_v34  ;;  %v706_v46 = vadd.f32 %v705_v19, %v1845_v36  ;;  %v702_v48 = vmul.f32 %v1388_v29, %v1849_v38 }
 0x16e   : > { %v699_v47 = vadd.f32 %v698_v25, %v697_v40  ;;  %v709_v49 = vmul.f32 %v1386_v20, %v1843_v35  ;;  %v711_v53 = vmul.f32 %v1388_v29, %v1855_v43 }
 0x16f   : > { %v683_v50 = vadd.f32 %v682_v33, %v681_v42  ;;  %v692_v51 = vadd.f32 %v691_v37, %v690_v44  ;;  %v708_v52 = vadd.f32 %v707_v26, %v706_v46 }
 0x170   : > { %v701_v54 = vadd.f32 %v700_v41, %v699_v47 }
 0x171   : > { %v685_v55 = vadd.f32 %v684_v39, %v683_v50  ;;  %v694_v56 = vadd.f32 %v693_v45, %v692_v51  ;;  %v710_v57 = vadd.f32 %v709_v49, %v708_v52 }
 0x172   : > { %v703_v58 = vadd.f32 %v702_v48, %v701_v54 }
 0x173   : > { %1389 = vtanh.f32 %v685_v55  ;;  %v712_v59 = vadd.f32 %v711_v53, %v710_v57 }
 0x174   : > { %1391 = vtanh.f32 %v694_v56 }
 0x175   : > { %1393 = vtanh.f32 %v703_v58 }
 0x176   : > { %1395 = vtanh.f32 %v712_v59 }
 0x180   : > { %v1390_v60 = vpop.eup %1389 }
 0x181   : > { %v1392_v61 = vpop.eup %1391  ;;  %v714_v62 = vmul.f32 %v1390_v60, %v1785_v0  ;;  %v723_v63 = vmul.f32 %v1390_v60, %v1795_v4  ;;  %v732_v8 = vmul.f32 %v1390_v60, %v1803_v7  ;;  %v741_v9 = vmul.f32 %v1390_v60, %v1815_v17 }
 0x182   : > { %v1394_v10 = vpop.eup %1393  ;;  %v716_v11 = vmul.f32 %v1392_v61, %v1787_v1  ;;  %v725_v13 = vmul.f32 %v1392_v61, %v1797_v5  ;;  %v734_v14 = vmul.f32 %v1392_v61, %v1809_v12  ;;  %v743_v15 = vmul.f32 %v1392_v61, %v1829_v27 }
 0x183   : > { %v1396_v16 = vpop.eup %1395  ;;  %v715_v18 = vadd.f32 %v714_v62, %v1823_v23  ;;  %v718_v19 = vmul.f32 %v1394_v10, %v1789_v2  ;;  %v724_v20 = vadd.f32 %v723_v63, %v1831_v28  ;;  %v727_v22 = vmul.f32 %v1394_v10, %v1801_v6 }
 0x184   : > { %v720_v24 = vmul.f32 %v1396_v16, %v1793_v3  ;;  %v733_v25 = vadd.f32 %v732_v8, %v1838_v32  ;;  %v736_v26 = vmul.f32 %v1394_v10, %v1835_v30  ;;  %v729_v33 = vmul.f32 %v1396_v16, %v1820_v21 }
 0x185   : > { %v717_v29 = vadd.f32 %v716_v11, %v715_v18  ;;  %v726_v31 = vadd.f32 %v725_v13, %v724_v20  ;;  %v742_v34 = vadd.f32 %v741_v9, %v1845_v36  ;;  %v738_v39 = vmul.f32 %v1396_v16, %v1849_v38 }
 0x186   : > { %v735_v37 = vadd.f32 %v734_v14, %v733_v25  ;;  %v745_v40 = vmul.f32 %v1394_v10, %v1843_v35  ;;  %v747_v45 = vmul.f32 %v1396_v16, %v1855_v43 }
 0x187   : > { %v719_v41 = vadd.f32 %v718_v19, %v717_v29  ;;  %v728_v42 = vadd.f32 %v727_v22, %v726_v31  ;;  %v744_v44 = vadd.f32 %v743_v15, %v742_v34 }
 0x188   : > { %v737_v46 = vadd.f32 %v736_v26, %v735_v37 }
 0x189   : > { %v721_v47 = vadd.f32 %v720_v24, %v719_v41  ;;  %v730_v48 = vadd.f32 %v729_v33, %v728_v42  ;;  %v746_v49 = vadd.f32 %v745_v40, %v744_v44 }
 0x18a   : > { %v739_v50 = vadd.f32 %v738_v39, %v737_v46 }
 0x18b   : > { %1397 = vtanh.f32 %v721_v47  ;;  %v748_v51 = vadd.f32 %v747_v45, %v746_v49 }
 0x18c   : > { %1399 = vtanh.f32 %v730_v48 }
 0x18d   : > { %1401 = vtanh.f32 %v739_v50 }
 0x18e   : > { %1403 = vtanh.f32 %v748_v51 }
 0x198   : > { %v1398_v52 = vpop.eup %1397 }
 0x199   : > { %v1400_v53 = vpop.eup %1399  ;;  %v750_v54 = vmul.f32 %v1398_v52, %v1785_v0  ;;  %v759_v55 = vmul.f32 %v1398_v52, %v1795_v4  ;;  %v768_v56 = vmul.f32 %v1398_v52, %v1803_v7  ;;  %v777_v57 = vmul.f32 %v1398_v52, %v1815_v17 }
 0x19a   : > { %v1402_v58 = vpop.eup %1401  ;;  %v752_v59 = vmul.f32 %v1400_v53, %v1787_v1  ;;  %v761_v60 = vmul.f32 %v1400_v53, %v1797_v5  ;;  %v770_v61 = vmul.f32 %v1400_v53, %v1809_v12  ;;  %v779_v62 = vmul.f32 %v1400_v53, %v1829_v27 }
 0x19b   : > { %v1404_v63 = vpop.eup %1403  ;;  %v751_v8 = vadd.f32 %v750_v54, %v1823_v23  ;;  %v754_v9 = vmul.f32 %v1402_v58, %v1789_v2  ;;  %v760_v10 = vadd.f32 %v759_v55, %v1831_v28  ;;  %v763_v11 = vmul.f32 %v1402_v58, %v1801_v6 }
 0x19c   : > { %v756_v13 = vmul.f32 %v1404_v63, %v1793_v3  ;;  %v769_v14 = vadd.f32 %v768_v56, %v1838_v32  ;;  %v772_v15 = vmul.f32 %v1402_v58, %v1835_v30  ;;  %v765_v19 = vmul.f32 %v1404_v63, %v1820_v21 }
 0x19d   : > { %v753_v16 = vadd.f32 %v752_v59, %v751_v8  ;;  %v762_v18 = vadd.f32 %v761_v60, %v760_v10  ;;  %v778_v20 = vadd.f32 %v777_v57, %v1845_v36  ;;  %v774_v24 = vmul.f32 %v1404_v63, %v1849_v38 }
 0x19e   : > { %v771_v22 = vadd.f32 %v770_v61, %v769_v14  ;;  %v781_v25 = vmul.f32 %v1402_v58, %v1843_v35  ;;  %v783_v33 = vmul.f32 %v1404_v63, %v1855_v43 }
 0x19f   : > { %v755_v26 = vadd.f32 %v754_v9, %v753_v16  ;;  %v764_v29 = vadd.f32 %v763_v11, %v762_v18  ;;  %v780_v31 = vadd.f32 %v779_v62, %v778_v20 }
 0x1a0   : > { %v773_v34 = vadd.f32 %v772_v15, %v771_v22 }
 0x1a1   : > { %v757_v37 = vadd.f32 %v756_v13, %v755_v26  ;;  %v766_v39 = vadd.f32 %v765_v19, %v764_v29  ;;  %v782_v40 = vadd.f32 %v781_v25, %v780_v31 }
 0x1a2   : > { %v775_v41 = vadd.f32 %v774_v24, %v773_v34 }
 0x1a3   : > { %1405 = vtanh.f32 %v757_v37  ;;  %v784_v42 = vadd.f32 %v783_v33, %v782_v40 }
 0x1a4   : > { %1407 = vtanh.f32 %v766_v39 }
 0x1a5   : > { %1409 = vtanh.f32 %v775_v41 }
 0x1a6   : > { %1411 = vtanh.f32 %v784_v42 }
 0x1b0   : > { %v1406_v44 = vpop.eup %1405 }
 0x1b1   : > { %v1408_v45 = vpop.eup %1407  ;;  %v786_v46 = vmul.f32 %v1406_v44, %v1785_v0  ;;  %v795_v47 = vmul.f32 %v1406_v44, %v1795_v4  ;;  %v804_v48 = vmul.f32 %v1406_v44, %v1803_v7  ;;  %v813_v49 = vmul.f32 %v1406_v44, %v1815_v17 }
 0x1b2   : > { %v1410_v50 = vpop.eup %1409  ;;  %v788_v51 = vmul.f32 %v1408_v45, %v1787_v1  ;;  %v797_v52 = vmul.f32 %v1408_v45, %v1797_v5  ;;  %v806_v53 = vmul.f32 %v1408_v45, %v1809_v12  ;;  %v815_v54 = vmul.f32 %v1408_v45, %v1829_v27 }
 0x1b3   : > { %v1412_v55 = vpop.eup %1411  ;;  %v787_v56 = vadd.f32 %v786_v46, %v1823_v23  ;;  %v790_v57 = vmul.f32 %v1410_v50, %v1789_v2  ;;  %v796_v58 = vadd.f32 %v795_v47, %v1831_v28  ;;  %v799_v59 = vmul.f32 %v1410_v50, %v1801_v6 }
 0x1b4   : > { %v792_v60 = vmul.f32 %v1412_v55, %v1793_v3  ;;  %v805_v61 = vadd.f32 %v804_v48, %v1838_v32  ;;  %v808_v62 = vmul.f32 %v1410_v50, %v1835_v30  ;;  %v801_v9 = vmul.f32 %v1412_v55, %v1820_v21 }
 0x1b5   : > { %v789_v63 = vadd.f32 %v788_v51, %v787_v56  ;;  %v798_v8 = vadd.f32 %v797_v52, %v796_v58  ;;  %v814_v10 = vadd.f32 %v813_v49, %v1845_v36  ;;  %v810_v13 = vmul.f32 %v1412_v55, %v1849_v38 }
 0x1b6   : > { %v807_v11 = vadd.f32 %v806_v53, %v805_v61  ;;  %v817_v14 = vmul.f32 %v1410_v50, %v1843_v35  ;;  %v819_v19 = vmul.f32 %v1412_v55, %v1855_v43 }
 0x1b7   : > { %v791_v15 = vadd.f32 %v790_v57, %v789_v63  ;;  %v800_v16 = vadd.f32 %v799_v59, %v798_v8  ;;  %v816_v18 = vadd.f32 %v815_v54, %v814_v10 }
 0x1b8   : > { %v809_v20 = vadd.f32 %v808_v62, %v807_v11 }
 0x1b9   : > { %v793_v22 = vadd.f32 %v792_v60, %v791_v15  ;;  %v802_v24 = vadd.f32 %v801_v9, %v800_v16  ;;  %v818_v25 = vadd.f32 %v817_v14, %v816_v18 }
 0x1ba   : > { %v811_v26 = vadd.f32 %v810_v13, %v809_v20 }
 0x1bb   : > { %1413 = vtanh.f32 %v793_v22  ;;  %v820_v29 = vadd.f32 %v819_v19, %v818_v25 }
 0x1bc   : > { %1415 = vtanh.f32 %v802_v24 }
 0x1bd   : > { %1417 = vtanh.f32 %v811_v26 }
 0x1be   : > { %1419 = vtanh.f32 %v820_v29 }
 0x1c8   : > { %v1414_v31 = vpop.eup %1413 }
 0x1c9   : > { %v1416_v33 = vpop.eup %1415  ;;  %v822_v34 = vmul.f32 %v1414_v31, %v1785_v0  ;;  %v831_v37 = vmul.f32 %v1414_v31, %v1795_v4  ;;  %v840_v39 = vmul.f32 %v1414_v31, %v1803_v7  ;;  %v849_v40 = vmul.f32 %v1414_v31, %v1815_v17 }
 0x1ca   : > { %v1418_v41 = vpop.eup %1417  ;;  %v824_v42 = vmul.f32 %v1416_v33, %v1787_v1  ;;  %v833_v44 = vmul.f32 %v1416_v33, %v1797_v5  ;;  %v842_v45 = vmul.f32 %v1416_v33, %v1809_v12  ;;  %v851_v46 = vmul.f32 %v1416_v33, %v1829_v27 }
 0x1cb   : > { %v1420_v47 = vpop.eup %1419  ;;  %v823_v48 = vadd.f32 %v822_v34, %v1823_v23  ;;  %v826_v49 = vmul.f32 %v1418_v41, %v1789_v2  ;;  %v832_v50 = vadd.f32 %v831_v37, %v1831_v28  ;;  %v835_v51 = vmul.f32 %v1418_v41, %v1801_v6 }
 0x1cc   : > { %v828_v52 = vmul.f32 %v1420_v47, %v1793_v3  ;;  %v841_v53 = vadd.f32 %v840_v39, %v1838_v32  ;;  %v844_v54 = vmul.f32 %v1418_v41, %v1835_v30  ;;  %v837_v57 = vmul.f32 %v1420_v47, %v1820_v21 }
 0x1cd   : > { %v825_v55 = vadd.f32 %v824_v42, %v823_v48  ;;  %v834_v56 = vadd.f32 %v833_v44, %v832_v50  ;;  %v850_v58 = vadd.f32 %v849_v40, %v1845_v36  ;;  %v846_v60 = vmul.f32 %v1420_v47, %v1849_v38 }
 0x1ce   : > { %v843_v59 = vadd.f32 %v842_v45, %v841_v53  ;;  %v853_v61 = vmul.f32 %v1418_v41, %v1843_v35  ;;  %v855_v9 = vmul.f32 %v1420_v47, %v1855_v43 }
 0x1cf   : > { %v827_v62 = vadd.f32 %v826_v49, %v825_v55  ;;  %v836_v63 = vadd.f32 %v835_v51, %v834_v56  ;;  %v852_v8 = vadd.f32 %v851_v46, %v850_v58 }
 0x1d0   : > { %v845_v10 = vadd.f32 %v844_v54, %v843_v59 }
 0x1d1   : > { %v829_v11 = vadd.f32 %v828_v52, %v827_v62  ;;  %v838_v13 = vadd.f32 %v837_v57, %v836_v63  ;;  %v854_v14 = vadd.f32 %v853_v61, %v852_v8 }
 0x1d2   : > { %v847_v15 = vadd.f32 %v846_v60, %v845_v10 }
 0x1d3   : > { %1421 = vtanh.f32 %v829_v11  ;;  %v856_v16 = vadd.f32 %v855_v9, %v854_v14 }
 0x1d4   : > { %1423 = vtanh.f32 %v838_v13 }
 0x1d5   : > { %1425 = vtanh.f32 %v847_v15 }
 0x1d6   : > { %1427 = vtanh.f32 %v856_v16 }
 0x1e0   : > { %v1422_v18 = vpop.eup %1421 }
 0x1e1   : > { %v1424_v19 = vpop.eup %1423  ;;  %v858_v20 = vmul.f32 %v1422_v18, %v1785_v0  ;;  %v867_v22 = vmul.f32 %v1422_v18, %v1795_v4  ;;  %v876_v24 = vmul.f32 %v1422_v18, %v1803_v7  ;;  %v885_v25 = vmul.f32 %v1422_v18, %v1815_v17 }
 0x1e2   : > { %v1426_v26 = vpop.eup %1425  ;;  %v860_v29 = vmul.f32 %v1424_v19, %v1787_v1  ;;  %v869_v31 = vmul.f32 %v1424_v19, %v1797_v5  ;;  %v878_v33 = vmul.f32 %v1424_v19, %v1809_v12  ;;  %v887_v34 = vmul.f32 %v1424_v19, %v1829_v27 }
 0x1e3   : > { %v1428_v37 = vpop.eup %1427  ;;  %v859_v39 = vadd.f32 %v858_v20, %v1823_v23  ;;  %v862_v40 = vmul.f32 %v1426_v26, %v1789_v2  ;;  %v868_v41 = vadd.f32 %v867_v22, %v1831_v28  ;;  %v871_v42 = vmul.f32 %v1426_v26, %v1801_v6 }
 0x1e4   : > { %v864_v44 = vmul.f32 %v1428_v37, %v1793_v3  ;;  %v877_v45 = vadd.f32 %v876_v24, %v1838_v32  ;;  %v880_v46 = vmul.f32 %v1426_v26, %v1835_v30  ;;  %v873_v49 = vmul.f32 %v1428_v37, %v1820_v21 }
 0x1e5   : > { %v861_v47 = vadd.f32 %v860_v29, %v859_v39  ;;  %v870_v48 = vadd.f32 %v869_v31, %v868_v41  ;;  %v886_v50 = vadd.f32 %v885_v25, %v1845_v36  ;;  %v882_v52 = vmul.f32 %v1428_v37, %v1849_v38 }
 0x1e6   : > { %v879_v51 = vadd.f32 %v878_v33, %v877_v45  ;;  %v889_v53 = vmul.f32 %v1426_v26, %v1843_v35  ;;  %v891_v57 = vmul.f32 %v1428_v37, %v1855_v43 }
 0x1e7   : > { %v863_v54 = vadd.f32 %v862_v40, %v861_v47  ;;  %v872_v55 = vadd.f32 %v871_v42, %v870_v48  ;;  %v888_v56 = vadd.f32 %v887_v34, %v886_v50 }
 0x1e8   : > { %v881_v58 = vadd.f32 %v880_v46, %v879_v51 }
 0x1e9   : > { %v865_v59 = vadd.f32 %v864_v44, %v863_v54  ;;  %v874_v60 = vadd.f32 %v873_v49, %v872_v55  ;;  %v890_v61 = vadd.f32 %v889_v53, %v888_v56 }
 0x1ea   : > { %v883_v62 = vadd.f32 %v882_v52, %v881_v58 }
 0x1eb   : > { %1429 = vtanh.f32 %v865_v59  ;;  %v892_v63 = vadd.f32 %v891_v57, %v890_v61 }
 0x1ec   : > { %1431 = vtanh.f32 %v874_v60 }
 0x1ed   : > { %1433 = vtanh.f32 %v883_v62 }
 0x1ee   : > { %1435 = vtanh.f32 %v892_v63 }
 0x1f8   : > { %v1430_v8 = vpop.eup %1429 }
 0x1f9   : > { %v1432_v9 = vpop.eup %1431  ;;  %v894_v10 = vmul.f32 %v1430_v8, %v1785_v0  ;;  %v903_v11 = vmul.f32 %v1430_v8, %v1795_v4  ;;  %v912_v13 = vmul.f32 %v1430_v8, %v1803_v7  ;;  %v921_v14 = vmul.f32 %v1430_v8, %v1815_v17 }
 0x1fa   : > { %v1434_v15 = vpop.eup %1433  ;;  %v896_v16 = vmul.f32 %v1432_v9, %v1787_v1  ;;  %v905_v18 = vmul.f32 %v1432_v9, %v1797_v5  ;;  %v914_v19 = vmul.f32 %v1432_v9, %v1809_v12  ;;  %v923_v20 = vmul.f32 %v1432_v9, %v1829_v27 }
 0x1fb   : > { %v1436_v22 = vpop.eup %1435  ;;  %v895_v24 = vadd.f32 %v894_v10, %v1823_v23  ;;  %v898_v25 = vmul.f32 %v1434_v15, %v1789_v2  ;;  %v904_v26 = vadd.f32 %v903_v11, %v1831_v28  ;;  %v907_v29 = vmul.f32 %v1434_v15, %v1801_v6 }
 0x1fc   : > { %v900_v31 = vmul.f32 %v1436_v22, %v1793_v3  ;;  %v913_v33 = vadd.f32 %v912_v13, %v1838_v32  ;;  %v916_v34 = vmul.f32 %v1434_v15, %v1835_v30  ;;  %v909_v40 = vmul.f32 %v1436_v22, %v1820_v21 }
 0x1fd   : > { %v897_v37 = vadd.f32 %v896_v16, %v895_v24  ;;  %v906_v39 = vadd.f32 %v905_v18, %v904_v26  ;;  %v922_v41 = vadd.f32 %v921_v14, %v1845_v36  ;;  %v918_v44 = vmul.f32 %v1436_v22, %v1849_v38 }
 0x1fe   : > { %v915_v42 = vadd.f32 %v914_v19, %v913_v33  ;;  %v925_v45 = vmul.f32 %v1434_v15, %v1843_v35  ;;  %v927_v49 = vmul.f32 %v1436_v22, %v1855_v43 }
 0x1ff   : > { %v899_v46 = vadd.f32 %v898_v25, %v897_v37  ;;  %v908_v47 = vadd.f32 %v907_v29, %v906_v39  ;;  %v924_v48 = vadd.f32 %v923_v20, %v922_v41 }
 0x200   : > { %v917_v50 = vadd.f32 %v916_v34, %v915_v42 }
 0x201   : > { %v901_v51 = vadd.f32 %v900_v31, %v899_v46  ;;  %v910_v52 = vadd.f32 %v909_v40, %v908_v47  ;;  %v926_v53 = vadd.f32 %v925_v45, %v924_v48 }
 0x202   : > { %v919_v54 = vadd.f32 %v918_v44, %v917_v50 }
 0x203   : > { %1437 = vtanh.f32 %v901_v51  ;;  %v928_v55 = vadd.f32 %v927_v49, %v926_v53 }
 0x204   : > { %1439 = vtanh.f32 %v910_v52 }
 0x205   : > { %1441 = vtanh.f32 %v919_v54 }
 0x206   : > { %1443 = vtanh.f32 %v928_v55 }
 0x210   : > { %v1438_v56 = vpop.eup %1437 }
 0x211   : > { %v1440_v57 = vpop.eup %1439  ;;  %v930_v58 = vmul.f32 %v1438_v56, %v1785_v0  ;;  %v939_v59 = vmul.f32 %v1438_v56, %v1795_v4  ;;  %v948_v60 = vmul.f32 %v1438_v56, %v1803_v7  ;;  %v957_v61 = vmul.f32 %v1438_v56, %v1815_v17 }
 0x212   : > { %v1442_v62 = vpop.eup %1441  ;;  %v932_v63 = vmul.f32 %v1440_v57, %v1787_v1  ;;  %v941_v8 = vmul.f32 %v1440_v57, %v1797_v5  ;;  %v950_v9 = vmul.f32 %v1440_v57, %v1809_v12  ;;  %v959_v10 = vmul.f32 %v1440_v57, %v1829_v27 }
 0x213   : > { %v1444_v11 = vpop.eup %1443  ;;  %v931_v13 = vadd.f32 %v930_v58, %v1823_v23  ;;  %v934_v14 = vmul.f32 %v1442_v62, %v1789_v2  ;;  %v940_v15 = vadd.f32 %v939_v59, %v1831_v28  ;;  %v943_v16 = vmul.f32 %v1442_v62, %v1801_v6 }
 0x214   : > { %v936_v18 = vmul.f32 %v1444_v11, %v1793_v3  ;;  %v949_v19 = vadd.f32 %v948_v60, %v1838_v32  ;;  %v952_v20 = vmul.f32 %v1442_v62, %v1835_v30  ;;  %v945_v25 = vmul.f32 %v1444_v11, %v1820_v21 }
 0x215   : > { %v933_v22 = vadd.f32 %v932_v63, %v931_v13  ;;  %v942_v24 = vadd.f32 %v941_v8, %v940_v15  ;;  %v958_v26 = vadd.f32 %v957_v61, %v1845_v36  ;;  %v954_v31 = vmul.f32 %v1444_v11, %v1849_v38 }
 0x216   : > { %v951_v29 = vadd.f32 %v950_v9, %v949_v19  ;;  %v961_v33 = vmul.f32 %v1442_v62, %v1843_v35  ;;  %v963_v40 = vmul.f32 %v1444_v11, %v1855_v43 }
 0x217   : > { %v935_v34 = vadd.f32 %v934_v14, %v933_v22  ;;  %v944_v37 = vadd.f32 %v943_v16, %v942_v24  ;;  %v960_v39 = vadd.f32 %v959_v10, %v958_v26 }
 0x218   : > { %v953_v41 = vadd.f32 %v952_v20, %v951_v29 }
 0x219   : > { %v937_v42 = vadd.f32 %v936_v18, %v935_v34  ;;  %v946_v44 = vadd.f32 %v945_v25, %v944_v37  ;;  %v962_v45 = vadd.f32 %v961_v33, %v960_v39 }
 0x21a   : > { %v955_v46 = vadd.f32 %v954_v31, %v953_v41 }
 0x21b   : > { %1445 = vtanh.f32 %v937_v42  ;;  %v964_v47 = vadd.f32 %v963_v40, %v962_v45 }
 0x21c   : > { %1447 = vtanh.f32 %v946_v44 }
 0x21d   : > { %1449 = vtanh.f32 %v955_v46 }
 0x21e   : > { %1451 = vtanh.f32 %v964_v47 }
 0x228   : > { %v1446_v48 = vpop.eup %1445 }
 0x229   : > { %v1448_v49 = vpop.eup %1447  ;;  %v966_v50 = vmul.f32 %v1446_v48, %v1785_v0  ;;  %v975_v51 = vmul.f32 %v1446_v48, %v1795_v4  ;;  %v984_v52 = vmul.f32 %v1446_v48, %v1803_v7  ;;  %v993_v53 = vmul.f32 %v1446_v48, %v1815_v17 }
 0x22a   : > { %v1450_v54 = vpop.eup %1449  ;;  %v968_v55 = vmul.f32 %v1448_v49, %v1787_v1  ;;  %v977_v56 = vmul.f32 %v1448_v49, %v1797_v5  ;;  %v986_v57 = vmul.f32 %v1448_v49, %v1809_v12  ;;  %v995_v58 = vmul.f32 %v1448_v49, %v1829_v27 }
 0x22b   : > { %v1452_v59 = vpop.eup %1451  ;;  %v967_v60 = vadd.f32 %v966_v50, %v1823_v23  ;;  %v970_v61 = vmul.f32 %v1450_v54, %v1789_v2  ;;  %v976_v62 = vadd.f32 %v975_v51, %v1831_v28  ;;  %v979_v63 = vmul.f32 %v1450_v54, %v1801_v6 }
 0x22c   : > { %v972_v8 = vmul.f32 %v1452_v59, %v1793_v3  ;;  %v985_v9 = vadd.f32 %v984_v52, %v1838_v32  ;;  %v988_v10 = vmul.f32 %v1450_v54, %v1835_v30  ;;  %v981_v14 = vmul.f32 %v1452_v59, %v1820_v21 }
 0x22d   : > { %v969_v11 = vadd.f32 %v968_v55, %v967_v60  ;;  %v978_v13 = vadd.f32 %v977_v56, %v976_v62  ;;  %v994_v15 = vadd.f32 %v993_v53, %v1845_v36  ;;  %v990_v18 = vmul.f32 %v1452_v59, %v1849_v38 }
 0x22e   : > { %v987_v16 = vadd.f32 %v986_v57, %v985_v9  ;;  %v997_v19 = vmul.f32 %v1450_v54, %v1843_v35  ;;  %v999_v25 = vmul.f32 %v1452_v59, %v1855_v43 }
 0x22f   : > { %v971_v20 = vadd.f32 %v970_v61, %v969_v11  ;;  %v980_v22 = vadd.f32 %v979_v63, %v978_v13  ;;  %v996_v24 = vadd.f32 %v995_v58, %v994_v15 }
 0x230   : > { %v989_v26 = vadd.f32 %v988_v10, %v987_v16 }
 0x231   : > { %v973_v29 = vadd.f32 %v972_v8, %v971_v20  ;;  %v982_v31 = vadd.f32 %v981_v14, %v980_v22  ;;  %v998_v33 = vadd.f32 %v997_v19, %v996_v24 }
 0x232   : > { %v991_v34 = vadd.f32 %v990_v18, %v989_v26 }
 0x233   : > { %1453 = vtanh.f32 %v973_v29  ;;  %v1000_v37 = vadd.f32 %v999_v25, %v998_v33 }
 0x234   : > { %1455 = vtanh.f32 %v982_v31 }
 0x235   : > { %1457 = vtanh.f32 %v991_v34 }
 0x236   : > { %1459 = vtanh.f32 %v1000_v37 }
 0x240   : > { %v1454_v39 = vpop.eup %1453 }
 0x241   : > { %v1456_v40 = vpop.eup %1455  ;;  %v1002_v41 = vmul.f32 %v1454_v39, %v1785_v0  ;;  %v1011_v42 = vmul.f32 %v1454_v39, %v1795_v4  ;;  %v1020_v44 = vmul.f32 %v1454_v39, %v1803_v7  ;;  %v1029_v45 = vmul.f32 %v1454_v39, %v1815_v17 }
 0x242   : > { %v1458_v46 = vpop.eup %1457  ;;  %v1004_v47 = vmul.f32 %v1456_v40, %v1787_v1  ;;  %v1013_v48 = vmul.f32 %v1456_v40, %v1797_v5  ;;  %v1022_v49 = vmul.f32 %v1456_v40, %v1809_v12  ;;  %v1031_v50 = vmul.f32 %v1456_v40, %v1829_v27 }
 0x243   : > { %v1460_v51 = vpop.eup %1459  ;;  %v1003_v52 = vadd.f32 %v1002_v41, %v1823_v23  ;;  %v1006_v0 = vmul.f32 %v1458_v46, %v1789_v2  ;;  %v1012_v4 = vadd.f32 %v1011_v42, %v1831_v28  ;;  %v1015_v7 = vmul.f32 %v1458_v46, %v1801_v6 }
 0x244   : > { %v1008_v17 = vmul.f32 %v1460_v51, %v1793_v3  ;;  %v1021_v53 = vadd.f32 %v1020_v44, %v1838_v32  ;;  %v1024_v1 = vmul.f32 %v1458_v46, %v1835_v30  ;;  %v1017_v12 = vmul.f32 %v1460_v51, %v1820_v21 }
 0x245   : > { %v1005_v5 = vadd.f32 %v1004_v47, %v1003_v52  ;;  %v1014_v54 = vadd.f32 %v1013_v48, %v1012_v4  ;;  %v1030_v27 = vadd.f32 %v1029_v45, %v1845_v36  ;;  %v1026_v23 = vmul.f32 %v1460_v51, %v1849_v38 }
 0x246   : > { %v1023_v55 = vadd.f32 %v1022_v49, %v1021_v53  ;;  %v1033_v2 = vmul.f32 %v1458_v46, %v1843_v35  ;;  %v1035_v32 = vmul.f32 %v1460_v51, %v1855_v43 }
 0x247   : > { %v1007_v6 = vadd.f32 %v1006_v0, %v1005_v5  ;;  %v1016_v28 = vadd.f32 %v1015_v7, %v1014_v54  ;;  %v1032_v3 = vadd.f32 %v1031_v50, %v1030_v27 }
 0x248   : > { %v1025_v56 = vadd.f32 %v1024_v1, %v1023_v55 }
 0x249   : > { %v1009_v30 = vadd.f32 %v1008_v17, %v1007_v6  ;;  %v1018_v57 = vadd.f32 %v1017_v12, %v1016_v28  ;;  %v1034_v58 = vadd.f32 %v1033_v2, %v1032_v3 }
 0x24a   : > { %v1027_v59 = vadd.f32 %v1026_v23, %v1025_v56 }
 0x24b   : > { %1461 = vtanh.f32 %v1009_v30  ;;  %v1036_v21 = vadd.f32 %v1035_v32, %v1034_v58 }
 0x24c   : > { %1463 = vtanh.f32 %v1018_v57 }
 0x24d   : > { %1465 = vtanh.f32 %v1027_v59 }
 0x24e   : > { %1467 = vtanh.f32 %v1036_v21 }
 0x258   : > { %v1462_v35 = vpop.eup %1461 }
 0x259   : > { %v1464_v36 = vpop.eup %1463  ;;  %1038 = vst [vmem:[%s230_s16] sm:$0x3] %v1462_v35 }
 0x25a   : > { %v1466_v38 = vpop.eup %1465  ;;  %1204 = vst [vmem:[%s230_s16 + $0x2] sm:$0x3] %v1464_v36 }
 0x25b   : > { %v1468_v43 = vpop.eup %1467  ;;  %1205 = vst [vmem:[%s230_s16 + $0x4] sm:$0x3] %v1466_v38 }
 0x25c   : > { %1206 = vst [vmem:[%s230_s16 + $0x6] sm:$0x3] %v1468_v43 }
 0x25d   : > { %1536 = shalt.err (!%p1533_p2)
}
 0x25e   : > { %s1537_s22 = scalar_lea.hbm %s2268_s25, 128  ;;  %s1541_s28 = scalar_lea.hbm %s2321_s3, 256 }
 0x25f   : > { %p1538_p8 = scmp.ne.s32.totalorder %s2268_s25, %s1537_s22  ;;  %p1542_p10 = scmp.lt.s32.totalorder %s2268_s25, %s2321_s3 }
 0x260   : > { %p1543_p11 = scmp.lt.s32.totalorder %s1541_s28, %s1537_s22 }
 0x261   : > { %p1539_p5 = pnand %p1538_p8, %p2342_p7 }
 0x262   : > { %p1544_p1 = por %p1543_p11, %p1542_p10 }
 0x263   : > { %p1540_p6 = pneg %p1539_p5 }
 0x265   : > { %p1545_p3 = pnand %p1544_p1, %p1540_p6 }
 0x267   : > { %1548 = shalt.err (!%p1545_p3)
}
 0x268   : > { %s1619_s11 = smov 32   ;;  %s1620_s20 = smov 2  }
 0x269   : > { %1224 = dma.vmem_to_hbm [thread:$0]  (%p2342_p7), %s2270_s5, 128, %s2268_s25, %s1046_s15, %s1619_s11, %s1619_s11, %s1620_s20  }
 0x26a PF: > { %s1075_s21 = sand.u32 1, %s1591_s12   ;;  %p2343_p13 = scmp.ne.s32.totalorder %s2333_s24, 0 }
 0x26b   : > { %p2344_p4 = scmp.ge.s32.totalorder %s1611_s17, 2  ;;  %s1076_s18 = scalar_lea.sflag [#allocation4], %s1075_s21 }
 0x26d   : > { %p1238_p0 = pnand %p2344_p4, %p2343_p13 }
 0x26f   : > { %p1239_p9 = pneg %p1238_p0 }
 0x271   : > { %1586 = dma.done.wait (%p1239_p9), %s1076_s18, 128  }
 0x272   : > { %1588 = vsyncadd (%p1239_p9), %s1076_s18, 4294967168  ;;  %s21_s17 = sadd.s32 1, %s1611_s17   ;;  %s2345_s15 = sld [smem:[#allocation14_spill]] }
 0x273   : > { %p18_p12 = scmp.ge.s32.totalorder %s21_s17, 4   ;;  %s2346_s16 = sld [smem:[#allocation15_spill]] }
 0x274   : > { %s2347_s12 = smov %s1595_s13  ;;  %s2348_s13 = smov %s1599_s14 }
 0x275   : > { %s2349_s14 = smov %s1742_s30  ;;  %20 = sbr.rel (!%p18_p12) target bundleno = 12 (0xc), region = 93 }
 0x27a   :  { %1081 = vsyncpa [#allocation3], 1 }
 0x27b   :  { %1083 = vsyncpa [#allocation3 + $0x1], 1 }
 0x27c   :  { %1084 = vsyncpa [#allocation4], 1 }
 0x27d   :  { %1086 = vsyncpa [#allocation4 + $0x1], 1 }
 0x27e   :  { %1087 = vsyncpa [#allocation5], 1 }
 0x27f   :  { %1089 = vsyncpa [#allocation5 + $0x1], 1 }
 0x280   :  { %1090 = vsyncpa [#allocation6], 1 }
 0x281   :  { %1092 = vsyncpa [#allocation6 + $0x1], 1 }

</bundles_post_ra>
